<compile_context>
chip_gen: v5e
topology: v5e:2x2
jax: 0.10.0
libtpu: 0.0.40
codegen_flags: <defaults>
</compile_context>

<pallas_src>
import math

import jax
import jax.numpy as jnp
from jax.experimental import pallas as pl
from jax.experimental.pallas import tpu as pltpu


def _pe_add_kernel(consts_ref, x_ref, o_ref):
    # consts_ref: (2, B*D) f32.  row 0: per-lane frequency (div_term[d//2] tiled
    #             over batch); row 1: per-lane phase (0.0 even d -> sin, pi/2 odd d -> cos).
    # x_ref/o_ref: (bs, B*D) lane-dense blocks of the flattened (S, B*D) slab.
    bs, bd = x_ref.shape
    seq0 = pl.program_id(0) * bs                       # seq offset of this block
    pos = (seq0 + jax.lax.broadcasted_iota(jnp.int32, (bs, bd), 0)).astype(jnp.float32)
    freq = consts_ref[0:1, :]                          # (1, bd) -> broadcast over seq axis
    phase = consts_ref[1:2, :]                         # (1, bd)
    pe = jnp.sin(pos * freq + phase)                   # single transcendental / element
    o_ref[...] = x_ref[...] + pe.astype(x_ref.dtype)


def make_pe(max_len, d_model, dtype=jnp.float32):
    """(max_len, d_model) sinusoidal table, exactly as the module's __init__ (reference only)."""
    assert d_model % 2 == 0, "d_model must be even (same restriction as the PyTorch module)"
    position = jnp.arange(max_len, dtype=jnp.float32)[:, None]
    div_term = jnp.exp(
        jnp.arange(0, d_model, 2, dtype=jnp.float32) * (-math.log(10000.0) / d_model))
    pe = jnp.zeros((max_len, d_model), jnp.float32)
    pe = pe.at[:, 0::2].set(jnp.sin(position * div_term))
    pe = pe.at[:, 1::2].set(jnp.cos(position * div_term))
    return pe.astype(dtype)


def _pe_lane_consts(batch, d_model):
    """(2, batch*d_model) f32: row 0 = frequency per flattened (b, d) lane,
    row 1 = phase (0.0 for even d -> sin, pi/2 for odd d -> cos)."""
    d = jnp.arange(d_model)
    freq = jnp.exp((d - d % 2).astype(jnp.float32) * (-math.log(10000.0) / d_model))
    phase = (d % 2).astype(jnp.float32) * jnp.float32(math.pi / 2.0)
    return jnp.stack([jnp.tile(freq, batch), jnp.tile(phase, batch)], axis=0)


def _sublane_multiple(dtype):
    """Minimum seq-tile granularity: 8 rows for 32-bit, 16 for bf16, 32 for int8/fp8."""
    return max(8, 32 // jnp.dtype(dtype).itemsize)


def _min_grid_steps():
    """v7x has 2 TensorCores sharing the 'parallel' axis -> want >= 4 blocks;
    single-TC v5e/v6e only need ~2 blocks for double-buffered DMA overlap."""
    try:
        kind = jax.devices()[0].device_kind.lower()
    except Exception:
        return 2
    return 4 if "7" in kind else 2


def _choose_block_rows(S, row_bytes, sublane, *, target_bytes=2 * 1024 * 1024, min_steps=2):
    """Seq-tile size: largest multiple of `sublane` keeping a block <= ~target_bytes
    while yielding >= ~min_steps grid steps when S allows."""
    if S <= sublane:
        return S                                    # full dim (allowed by the tiling rules)
    by_bytes = max(sublane, (target_bytes // max(row_bytes, 1)) // sublane * sublane)
    by_steps = max(sublane, (-(-S // min_steps)) // sublane * sublane)
    return min(by_bytes, by_steps, S)


def positional_encoding_forward(x):
    """x: (S, B, D).  Returns x + pe[:S] broadcast over batch (eval-mode forward).

    Note: pass x with jax.jit(..., donate_argnums=0) so the in-place alias on x's
    buffer is real; without donation XLA inserts a defensive copy of x.
    Best layout: B*D a multiple of 128 (lane-dense, unmasked vector stores).
    """
    S, B, D = x.shape
    assert D % 2 == 0, "d_model must be even (same restriction as the PyTorch module)"
    BD = B * D
    x2 = x.reshape(S, BD)                          # free row-major collapse -> lane-dense slab
    consts = _pe_lane_consts(B, D)                 # tiny (2, BD) f32, DMA'd once

    bs = _choose_block_rows(
        S, BD * x2.dtype.itemsize, _sublane_multiple(x2.dtype), min_steps=_min_grid_steps())
    grid = (pl.cdiv(S, bs),)

    out2 = pl.pallas_call(
        _pe_add_kernel,
        out_shape=jax.ShapeDtypeStruct((S, BD), x.dtype),
        grid_spec=pltpu.PrefetchScalarGridSpec(
            num_scalar_prefetch=0,
            grid=grid,
            in_specs=[
                pl.BlockSpec((2, BD), lambda i: (0, 0)),   # constant block (block idx fixed)
                pl.BlockSpec((bs, BD), lambda i: (i, 0)),
            ],
            out_specs=pl.BlockSpec((bs, BD), lambda i: (i, 0)),
        ),
        compiler_params=pltpu.CompilerParams(
            dimension_semantics=("parallel",),
            vmem_limit_bytes=32 * 1024 * 1024,     # explicit; ~2 MiB blocks fit v5e/v6e/v7x
        ),
        input_output_aliases={1: 0},               # in-place add on x's (reshaped) buffer
    )(consts, x2)

    return out2.reshape(S, B, D)


if __name__ == "__main__":
    max_len = 256
    d_model = 64       # B*D = 128 -> lane-dense, unmasked vector loads/stores
    seq_len = 128      # multiple seq tiles -> exercises the pipelined, multi-step grid
    batch = 2

    key = jax.random.PRNGKey(0)
    x = jax.random.normal(key, (seq_len, batch, d_model), dtype=jnp.float32)

    # pure-JAX reference (eval-mode forward): x + pe[:S, None, :] -- computed BEFORE
    # the donating call so x's buffer is still valid for the reference.
    pe = make_pe(max_len, d_model, dtype=x.dtype)
    ref = jax.block_until_ready(x + pe[:seq_len][:, None, :])

    fwd = jax.jit(positional_encoding_forward, donate_argnums=0)
    out = jax.block_until_ready(fwd(x))

    assert out.shape == (seq_len, batch, d_model)
    # phase identity sin(a + pi/2) == cos(a) deviates by ~|a|*eps_f32 on odd-d lanes;
    # tolerance loosened slightly per review.
    assert jnp.allclose(out, ref, atol=1e-4, rtol=1e-5), float(jnp.max(jnp.abs(out - ref)))
    print("KERNEL_OK")
</pallas_src>

<mosaic_0001>
module attributes {stable_mosaic.version = 11 : i64} {
  func.func @_pe_add_kernel(%arg0: i32, %arg1: memref<2x128xf32, #tpu.memory_space<vmem>>, %arg2: memref<64x128xf32, #tpu.memory_space<vmem>>, %arg3: memref<64x128xf32, #tpu.memory_space<vmem>>) attributes {dimension_semantics = [#tpu.dimension_semantics<parallel>], iteration_bounds = array<i64: 2>, scalar_prefetch = 0 : i64, scratch_operands = 0 : i64, tpu.core_type = #tpu.core_type<tc>, window_params = [{pipeline_mode = #tpu.pipeline_mode<synchronous>, transform_indices = @transform_0, window_bounds = array<i64: 2, 128>}, {transform_indices = @transform_1, window_bounds = array<i64: 64, 128>}, {transform_indices = @transform_2, window_bounds = array<i64: 64, 128>}]} {
    %c64_i32 = arith.constant 64 : i32
    %0 = arith.muli %arg0, %c64_i32 : i32
    %1 = tpu.iota {dimensions = array<i32: 0>} : vector<64x128xi32>
    %2 = vector.broadcast %0 : i32 to vector<64x128xi32>
    %3 = arith.addi %2, %1 : vector<64x128xi32>
    %4 = arith.sitofp %3 : vector<64x128xi32> to vector<64x128xf32>
    %c0 = arith.constant 0 : index
    %c0_0 = arith.constant 0 : index
    %5 = vector.load %arg1[%c0, %c0_0] : memref<2x128xf32, #tpu.memory_space<vmem>>, vector<1x128xf32>
    %c1 = arith.constant 1 : index
    %c0_1 = arith.constant 0 : index
    %6 = vector.load %arg1[%c1, %c0_1] : memref<2x128xf32, #tpu.memory_space<vmem>>, vector<1x128xf32>
    %7 = vector.broadcast %5 : vector<1x128xf32> to vector<64x128xf32>
    %8 = arith.mulf %4, %7 : vector<64x128xf32>
    %9 = vector.broadcast %6 : vector<1x128xf32> to vector<64x128xf32>
    %10 = arith.addf %8, %9 : vector<64x128xf32>
    %11 = math.sin %10 : vector<64x128xf32>
    %c0_2 = arith.constant 0 : index
    %c0_3 = arith.constant 0 : index
    %12 = vector.load %arg2[%c0_2, %c0_3] : memref<64x128xf32, #tpu.memory_space<vmem>>, vector<64x128xf32>
    %13 = arith.addf %12, %11 : vector<64x128xf32>
    %c0_4 = arith.constant 0 : index
    %c0_5 = arith.constant 0 : index
    %14 = vector.load %arg3[%c0_4, %c0_5] : memref<64x128xf32, #tpu.memory_space<vmem>>, vector<64x128xf32>
    tpu.vector_store %arg3[%c0_4, %c0_5], %13 {strides = array<i32>} : memref<64x128xf32, #tpu.memory_space<vmem>>, vector<64x128xf32>,
    return
  }
  func.func @transform_0(%arg0: i32) -> (i32, i32) {
    %c0_i32 = arith.constant 0 : i32
    %c0_i32_0 = arith.constant 0 : i32
    %c0_i32_1 = arith.constant 0 : i32
    return %c0_i32, %c0_i32_0 : i32, i32
  }
  func.func @transform_1(%arg0: i32) -> (i32, i32) {
    %c0_i32 = arith.constant 0 : i32
    %c0_i32_0 = arith.constant 0 : i32
    return %arg0, %c0_i32 : i32, i32
  }
  func.func @transform_2(%arg0: i32) -> (i32, i32) {
    %c0_i32 = arith.constant 0 : i32
    %c0_i32_0 = arith.constant 0 : i32
    return %arg0, %c0_i32 : i32, i32
  }
}

</mosaic_0001>

<bundles_post_ra>
// kernel: tile.19
= control target key start
LH: loop header
LB: loop body
LE: loop exit
PB: predicated region body
PF: predicated region fallthrough
CT: control target
= control target key end

     0   :  { %vm7_vm0 = vcmask 523264   ;;  %vm13_vm1 = vcmask 1048064   ;;  %s39_s0 = inlined_call_operand.vmem [shape: f32[2,64], index: 0, kind: input, shape index: {}]   ;;  %s40_s1 = inlined_call_operand.vmem [shape: f32[1,128], index: 1, kind: output, shape index: {}]  }
   0x1   :  { %v4_v0 = vld [vmem:[%s39_s0] sm:$0x3]  ;;  %s22_s0 = smov 64  }
   0x2   :  { %5 = vst [vmem:[#allocation1] sm:$0x3] %v4_v0 }
   0x9   :  { %v10_v1 = vld [vmem:[#allocation1 + $0x1] sm:$0x1]   ;;  %v6_v2 = vld [vmem:[#allocation1] sm:$0x1]  }
   0xa   :  { %11 = vrot.lane.b32.xlu0 %v10_v1, %s22_s0  ;;  %8 = vst.msk [vmem:[#allocation0] sm:$0x1] %vm7_vm0, %v6_v2  }
  0x7c   :  { %v12_v3 = vpop.permute.xlu0 %11  }
  0x7d   :  { %14 = vst.msk [vmem:[#allocation0] sm:$0x1] %vm13_vm1, %v12_v3  }
  0x84   :  { %v17_v4 = vld [vmem:[#allocation0] sm:$0x1] }
  0x85   :  { %20 = vst [vmem:[%s40_s1] sm:$0x1] %v17_v4 }

// kernel: tile.17
= control target key start
LH: loop header
LB: loop body
LE: loop exit
PB: predicated region body
PF: predicated region fallthrough
CT: control target
= control target key end

     0   :  { %s22_s0 = inlined_call_operand.vmem [shape: f32[64], index: 0, kind: input, shape index: {}]   ;;  %s23_s1 = inlined_call_operand.vmem [shape: f32[2,64], index: 1, kind: output, shape index: {}]  }
   0x1   :  { %v4_v0 = vld [vmem:[%s22_s0] ss:$0 sm:$0xff] }
   0x2   :  { %5 = vst [vmem:[%s23_s1] sm:$0x3] %v4_v0 }

// kernel: positional_encoding_forward.1
= control target key start
LH: loop header
LB: loop body
LE: loop exit
PB: predicated region body
PF: predicated region fallthrough
CT: control target
= control target key end

     0   :  { %s1598_s9 = smov 0   ;;  %s2834_s0 = inlined_call_operand.vmem [shape: f32[2,128], index: 0, kind: input, shape index: {}]   ;;  %s2835_s1 = inlined_call_operand.vmem [shape: f32[128,128], index: 1, kind: input, shape index: {}, may-alias: {1,2}]   ;;  %s2836_s2 = inlined_call_operand.vmem [shape: f32[128,128], index: 2, kind: output, shape index: {}, may-alias: {1,2}]  }
   0x1 LB: > { %s1514_s10 = sadd.s32 4294967295, %s1574_s9   ;;  %p1518_p0 = scmp.ge.s32.totalorder %s1574_s9, 1  ;;  %s1574_s9 = sphi %s1598_s9, %s12_s9  }
   0x2   : > { %p113_p1 = scmp.lt.s32.totalorder %s1574_s9, 3 }
   0x4   : > { %p114_p2 = pnand %p1518_p0, %p113_p1 }
   0x6   : > { %117 = sbr.rel (%p114_p2) target bundleno = 359 (0x167), region = 28 }
   0xb   : > { %s1523_s11 = sshll.u32 %s1514_s10, 6  ;;  %v148_v0 = vlaneseq  ;;  %v1619_v6 = vld [vmem:[%s2834_s0] ss:$0 sm:$0xff]  ;;  %v1626_v10 = vld [vmem:[%s2834_s0 + $0x1] ss:$0 sm:$0xff]  ;;  %s2760_s18 = sshll.u32 %s1514_s10, 3 }
   0xc   : > { %v1610_v2 = vstv %s1523_s11  ;;  %v2854_v43 = vmov 683565275   ;;  %v2848_v45 = vmov 2475754826   ;;  %v2839_v47 = vmov 2131351028  }
   0xd   : > { %v1608_v1 = vshrl.u32 %v148_v0, 7  ;;  %v2846_v49 = vmov 2102212464   ;;  %v2844_v51 = vmov 920167782   ;;  %p136_p3 = scmp.lt.s32.totalorder %s2760_s18, 15 }
   0xe   : > { %v2842_v60 = vmov 1326507024  }
   0xf   : > { %v150_v3 = vadd.s32 8, %v1608_v1  ;;  %v151_v4 = vadd.s32 16, %v1608_v1  ;;  %v158_v5 = vadd.s32 %v1610_v2, %v1608_v1  ;;  %s2885_s18 = smov (!%p136_p3, %s2760_s18), 15 }
  0x10   : > { %s1520_s19 = sshll.u32 %s2885_s18, 3 }
  0x11   : > { %v159_v7 = vadd.s32 %v1610_v2, %v150_v3  ;;  %v160_v8 = vadd.s32 %v1610_v2, %v151_v4  ;;  %v166_v9 = vcvt.s32.f32 %v158_v5  ;;  %s139_s22 = scalar_lea.vmem %s2835_s1, %s1520_s19  ;;  %s2811_s25 = scalar_lea.vmem %s2836_s2, %s1520_s19 }
  0x13   : > { %v167_v11 = vcvt.s32.f32 %v159_v7  ;;  %v168_v12 = vcvt.s32.f32 %v160_v8  ;;  %v177_v13 = vmul.f32 %v1619_v6, %v166_v9 }
  0x15   : > { %v178_v14 = vmul.f32 %v1619_v6, %v167_v11  ;;  %v179_v15 = vmul.f32 %v1619_v6, %v168_v12  ;;  %v1632_v16 = vadd.f32 %v1626_v10, %v177_v13 }
  0x17   : > { %v1635_v17 = vadd.f32 %v1626_v10, %v178_v14  ;;  %v1638_v18 = vadd.f32 %v1626_v10, %v179_v15  ;;  %v194_v19 = vand.u32 2147483647, %v1632_v16  ;;  %v197_v20 = vand.u32 2139095040, %v1632_v16 }
  0x19   : > { %2855 = vst [vmem:[#allocation2_spill] sm:$0xff] %v1638_v18  ;;  %v201_v21 = vand.u32 8388607, %v194_v19  ;;  %v352_v22 = vand.u32 2139095040, %v1635_v17  ;;  %v198_v23 = vshrl.u32 %v197_v20, 23  ;;  %v507_v26 = vand.u32 2139095040, %v1638_v18 }
  0x1a   : > { %v349_v24 = vand.u32 2147483647, %v1635_v17 }
  0x1b   : > { %v353_v25 = vshrl.u32 %v352_v22, 23  ;;  %v1524_v27 = vadd.s32 4294967169, %v198_v23  ;;  %v202_v28 = vor.u32 8388608, %v201_v21  ;;  %v508_v33 = vshrl.u32 %v507_v26, 23 }
  0x1c   : > { %v356_v31 = vand.u32 8388607, %v349_v24 }
  0x1d   : > { %v1527_v29 = vadd.s32 4294967169, %v353_v25  ;;  %v204_v30 = vadd.s32 1, %v1524_v27  ;;  %v1649_v35 = vshll.u32 %v202_v28, 8  ;;  %v1655_v41 = vadd.s32 4294967169, %v508_v33 }
  0x1e   : > { %v357_v37 = vor.u32 8388608, %v356_v31 }
  0x1f   : > { %v359_v32 = vadd.s32 1, %v1527_v29  ;;  %vm205_vm0 = vcmp.gt.s32.totalorder %v204_v30, 0  ;;  %v243_v53 = vand.u32 65535, %v1649_v35  ;;  %v244_v54 = vshrl.u32 %v1649_v35, 16 }
  0x20   : > { %v206_v34 = vsel %vm205_vm0, %v204_v30, 0  ;;  %v1667_v58 = vshll.u32 %v357_v37, 8 }
  0x21   : > { %vm360_vm1 = vcmp.gt.s32.totalorder %v359_v32, 0  ;;  %v208_v36 = vand.u32 31, %v206_v34  ;;  %v1651_v39 = vshrl.u32 %v206_v34, 5 }
  0x22   : > { %v361_v38 = vsel %vm360_vm1, %v359_v32, 0 }
  0x23   : > { %v1653_v40 = vand.u32 31, %v361_v38  ;;  %v209_v42 = vsub.s32 32, %v208_v36  ;;  %v211_v44 = vshll.u32 %v2854_v43, %v208_v36  ;;  %v214_v46 = vshll.u32 %v2848_v45, %v208_v36 }
  0x24   : > { %v217_v48 = vshll.u32 %v2839_v47, %v208_v36  ;;  %v220_v50 = vshll.u32 %v2846_v49, %v208_v36  ;;  %v223_v52 = vshll.u32 %v2844_v51, %v208_v36  ;;  %vm226_vm2 = vcmp.lt.s32.totalorder %v1651_v39, 1 }
  0x25   : > { %v212_v55 = vshrl.u32 %v2848_v45, %v209_v42  ;;  %v215_v56 = vshrl.u32 %v2839_v47, %v209_v42  ;;  %v218_v57 = vshrl.u32 %v2846_v49, %v209_v42  ;;  %v221_v59 = vshrl.u32 %v2844_v51, %v209_v42 }
  0x26   : > { %v224_v61 = vshrl.u32 %v2842_v60, %v209_v42  ;;  %vm229_vm3 = vcmp.lt.s32.totalorder %v1651_v39, 4  ;;  %v1674_v3 = vsub.s32 32, %v1653_v40  ;;  %v210_v4 = vshrl.u32 %v2854_v43, %v209_v42 }
  0x27   : > { %v213_v62 = vor.u32 %v212_v55, %v211_v44  ;;  %v216_v63 = vor.u32 %v215_v56, %v214_v46  ;;  %v219_v0 = vor.u32 %v218_v57, %v217_v48  ;;  %v222_v5 = vor.u32 %v221_v59, %v220_v50 }
  0x28   : > { %v225_v7 = vor.u32 %v224_v61, %v223_v52  ;;  %vm228_vm4 = vcmp.lt.s32.totalorder %v1651_v39, 3  ;;  %vm227_vm5 = vcmp.lt.s32.totalorder %v1651_v39, 2  ;;  %v1683_v11 = vshrl.u32 %v361_v38, 5 }
  0x29   : > { %v234_v8 = vsel %vm226_vm2, %v213_v62, %v216_v63  ;;  %v238_v9 = vsel %vm226_vm2, %v216_v63, %v219_v0  ;;  %v235_v12 = vsel %vm229_vm3, %v222_v5, 920167782  ;;  %v366_v14 = vshll.u32 %v2854_v43, %v1653_v40 }
  0x2a   : > { %v239_v13 = vsel %vm229_vm3, %v225_v7, 1326507024  ;;  %v369_v15 = vshll.u32 %v2848_v45, %v1653_v40  ;;  %v231_v20 = vsel %vm229_vm3, %v219_v0, 2102212464  ;;  %v236_v21 = vsel %vm228_vm4, %v219_v0, %v235_v12 }
  0x2b   : > { %v240_v22 = vsel %vm228_vm4, %v222_v5, %v239_v13  ;;  %v367_v23 = vshrl.u32 %v2848_v45, %v1674_v3  ;;  %v230_v25 = vsel %vm226_vm2, %v210_v4, %v213_v62  ;;  %v237_v26 = vsel %vm227_vm5, %v234_v8, %v236_v21 }
  0x2c   : > { %v241_v27 = vsel %vm227_vm5, %v238_v9, %v240_v22  ;;  %v370_v28 = vshrl.u32 %v2839_v47, %v1674_v3  ;;  %v267_v31 = vand.u32 65535, %v237_v26  ;;  %v268_v32 = vshrl.u32 %v237_v26, 16 }
  0x2d   : > { %v245_v29 = vand.u32 65535, %v241_v27  ;;  %v246_v30 = vshrl.u32 %v241_v27, 16  ;;  %v232_v33 = vsel %vm228_vm4, %v216_v63, %v231_v20  ;;  %v1711_v34 = vor.u32 %v367_v23, %v366_v14 }
  0x2e   : > { %v1713_v36 = vor.u32 %v370_v28, %v369_v15  ;;  %v372_v37 = vshll.u32 %v2839_v47, %v1653_v40  ;;  %v373_v46 = vshrl.u32 %v2846_v49, %v1674_v3  ;;  %v269_v50 = vmul.u32 %v267_v31, %v243_v53 }
  0x2f   : > { %v247_v38 = vmul.u32 %v245_v29, %v243_v53  ;;  %v248_v42 = vmul.u32 %v246_v30, %v243_v53  ;;  %v249_v44 = vmul.u32 %v245_v29, %v244_v54  ;;  %v250_v48 = vmul.u32 %v246_v30, %v244_v54 }
  0x30   : > { %v270_v52 = vmul.u32 %v268_v32, %v243_v53  ;;  %v271_v55 = vmul.u32 %v267_v31, %v244_v54  ;;  %v272_v61 = vmul.u32 %v268_v32, %v244_v54  ;;  %v375_v8 = vshll.u32 %v2846_v49, %v1653_v40 }
  0x31   : > { %v251_v56 = vshll.u32 %v248_v42, 16  ;;  %v252_v57 = vshrl.u32 %v248_v42, 16  ;;  %v253_v59 = vshll.u32 %v249_v44, 16  ;;  %v254_v62 = vshrl.u32 %v249_v44, 16 }
  0x32   : > { %v273_v63 = vshll.u32 %v270_v52, 16  ;;  %v274_v0 = vshrl.u32 %v270_v52, 16  ;;  %v275_v4 = vshll.u32 %v271_v55, 16  ;;  %v276_v7 = vshrl.u32 %v271_v55, 16 }
  0x33   : > { %vm255_vm6 = vc.u32 %v247_v38, %v251_v56  ;;  %v257_v5 = vadd.s32 %v251_v56, %v247_v38  ;;  %v1582_v9 = vmov 0   ;;  %v376_v13 = vshrl.u32 %v2844_v51, %v1674_v3 }
  0x34   : > { %v256_v12 = vsel %vm255_vm6, 1, %v1582_v9  ;;  %vm277_vm7 = vc.u32 %v269_v50, %v273_v63  ;;  %v279_v53 = vadd.s32 %v273_v63, %v269_v50  ;;  %v378_v15 = vshll.u32 %v2844_v51, %v1653_v40 }
  0x35   : > { %v258_v14 = vadd.s32 %v256_v12, %v250_v48  ;;  %vm259_vm8 = vc.u32 %v257_v5, %v253_v59  ;;  %v278_v54 = vsel %vm277_vm7, 1, %v1582_v9  ;;  %v1728_v22 = vor.u32 %v373_v46, %v372_v37 }
  0x36   : > { %v260_v20 = vsel %vm259_vm8, 1, %v1582_v9  ;;  %v280_v21 = vadd.s32 %v278_v54, %v272_v61  ;;  %vm281_vm9 = vc.u32 %v279_v53, %v275_v4  ;;  %v377_v27 = vor.u32 %v376_v13, %v375_v8 }
  0x37   : > { %v262_v23 = vadd.s32 %v260_v20, %v258_v14  ;;  %v282_v26 = vsel %vm281_vm9, 1, %v1582_v9  ;;  %v379_v28 = vshrl.u32 %v2842_v60, %v1674_v3  ;;  %v1733_v29 = vadd.s32 %v279_v53, %v275_v4 }
  0x38   : > { %v284_v30 = vadd.s32 %v282_v26, %v280_v21  ;;  %vm381_vm10 = vcmp.lt.s32.totalorder %v1683_v11, 1  ;;  %vm383_vm11 = vcmp.lt.s32.totalorder %v1683_v11, 3  ;;  %vm382_vm12 = vcmp.lt.s32.totalorder %v1683_v11, 2 }
  0x39   : > { %v263_v40 = vadd.s32 %v262_v23, %v252_v57  ;;  %v380_v31 = vor.u32 %v379_v28, %v378_v15  ;;  %vm384_vm13 = vcmp.lt.s32.totalorder %v1683_v11, 4  ;;  %v233_v32 = vsel %vm227_vm5, %v230_v25, %v232_v33 }
  0x3a   : > { %v285_v37 = vadd.s32 %v284_v30, %v274_v0  ;;  %v389_v38 = vsel %vm381_vm10, %v1711_v34, %v1713_v36  ;;  %v390_v42 = vsel %vm384_vm13, %v377_v27, 920167782  ;;  %v393_v39 = vsel %vm381_vm10, %v1713_v36, %v1728_v22 }
  0x3b   : > { %v1747_v44 = vadd.s32 %v263_v40, %v254_v62  ;;  %v391_v46 = vsel %vm383_vm11, %v1728_v22, %v390_v42  ;;  %v398_v25 = vand.u32 65535, %v1667_v58  ;;  %v394_v50 = vsel %vm384_vm13, %v380_v31, 1326507024 }
  0x3c   : > { %v286_v33 = vadd.s32 %v285_v37, %v276_v7  ;;  %v392_v48 = vsel %vm382_vm12, %v389_v38, %v391_v46  ;;  %v399_v52 = vshrl.u32 %v1667_v58, 16  ;;  %v287_v55 = vmul.u32 %v1649_v35, %v233_v32 }
  0x3d   : > { %vm289_vm14 = vc.u32 %v1747_v44, %v1733_v29  ;;  %v395_v56 = vsel %vm383_vm11, %v377_v27, %v394_v50  ;;  %v422_v57 = vand.u32 65535, %v392_v48  ;;  %v423_v62 = vshrl.u32 %v392_v48, 16 }
  0x3e   : > { %v290_v59 = vadd.s32 1, %v286_v33  ;;  %v396_v61 = vsel %vm382_vm12, %v393_v39, %v395_v56  ;;  %v514_v8 = vadd.s32 1, %v1655_v41  ;;  %v365_v56 = vshrl.u32 %v2854_v43, %v1674_v3 }
  0x3f   : > { %v400_v63 = vand.u32 65535, %v396_v61  ;;  %v401_v0 = vshrl.u32 %v396_v61, 16  ;;  %v425_v5 = vmul.u32 %v423_v62, %v398_v25  ;;  %v426_v7 = vmul.u32 %v422_v57, %v399_v52 }
  0x40   : > { %v291_v4 = vsel %vm289_vm14, %v290_v59, %v286_v33  ;;  %v424_v13 = vmul.u32 %v422_v57, %v398_v25  ;;  %vm515_vm15 = vcmp.gt.s32.totalorder %v514_v8, 0  ;;  %v427_v28 = vmul.u32 %v423_v62, %v399_v52 }
  0x41   : > { %v292_v35 = vadd.s32 %v291_v4, %v287_v55  ;;  %v402_v12 = vmul.u32 %v400_v63, %v398_v25  ;;  %v403_v53 = vmul.u32 %v401_v0, %v398_v25  ;;  %v404_v14 = vmul.u32 %v400_v63, %v399_v52 }
  0x42   : > { %v428_v54 = vshll.u32 %v425_v5, 16  ;;  %v430_v21 = vshll.u32 %v426_v7, 16  ;;  %v405_v27 = vmul.u32 %v401_v0, %v399_v52  ;;  %v516_v31 = vsel %vm515_vm15, %v514_v8, 0 }
  0x43   : > { %v406_v15 = vshll.u32 %v403_v53, 16  ;;  %v408_v20 = vshll.u32 %v404_v14, 16  ;;  %v293_v23 = vadd.s32 536870912, %v292_v35  ;;  %v518_v42 = vand.u32 31, %v516_v31 }
  0x44   : > { %vm432_vm1 = vc.u32 %v424_v13, %v428_v54  ;;  %v434_v30 = vadd.s32 %v428_v54, %v424_v13  ;;  %v407_v33 = vshrl.u32 %v403_v53, 16  ;;  %v429_v50 = vshrl.u32 %v425_v5, 16 }
  0x45   : > { %vm410_vm0 = vc.u32 %v402_v12, %v406_v15  ;;  %v412_v26 = vadd.s32 %v406_v15, %v402_v12  ;;  %v433_v41 = vsel %vm432_vm1, 1, %v1582_v9  ;;  %v1772_v32 = vshrl.u32 %v293_v23, 30 }
  0x46   : > { %v411_v40 = vsel %vm410_vm0, 1, %v1582_v9  ;;  %vm436_vm3 = vc.u32 %v434_v30, %v430_v21  ;;  %v435_v38 = vadd.s32 %v433_v41, %v427_v28  ;;  %v1777_v55 = vsub.s32 32, %v518_v42 }
  0x47   : > { %vm414_vm2 = vc.u32 %v412_v26, %v408_v20  ;;  %v413_v37 = vadd.s32 %v411_v40, %v405_v27  ;;  %v437_v39 = vsel %vm436_vm3, 1, %v1582_v9  ;;  %v295_v25 = vshll.u32 %v1772_v32, 30 }
  0x48   : > { %v415_v46 = vsel %vm414_vm2, 1, %v1582_v9  ;;  %v439_v52 = vadd.s32 %v437_v39, %v435_v38  ;;  %v386_v57 = vsel %vm384_vm13, %v1728_v22, 2102212464  ;;  %v504_v59 = vand.u32 2147483647, %v1638_v18 }
  0x49   : > { %v417_v48 = vadd.s32 %v415_v46, %v413_v37  ;;  %v1785_v61 = vsub.s32 %v292_v35, %v295_v25  ;;  %v409_v62 = vshrl.u32 %v404_v14, 16  ;;  %v431_v63 = vshrl.u32 %v426_v7, 16 }
  0x4a   : > { %v1787_v0 = vshrl.u32 %v516_v31, 5  ;;  %v440_v5 = vadd.s32 %v439_v52, %v429_v50  ;;  %v530_v8 = vshll.u32 %v2846_v49, %v518_v42  ;;  %v531_v12 = vshrl.u32 %v2844_v51, %v1777_v55 }
  0x4b   : > { %v418_v4 = vadd.s32 %v417_v48, %v407_v33  ;;  %v524_v3 = vshll.u32 %v2848_v45, %v518_v42  ;;  %v525_v22 = vshrl.u32 %v2839_v47, %v1777_v55  ;;  %v527_v53 = vshll.u32 %v2839_v47, %v518_v42 }
  0x4c   : > { %v528_v35 = vshrl.u32 %v2846_v49, %v1777_v55  ;;  %v385_v7 = vsel %vm381_vm10, %v365_v56, %v1711_v34  ;;  %v511_v13 = vand.u32 8388607, %v504_v59  ;;  %v533_v14 = vshll.u32 %v2844_v51, %v518_v42 }
  0x4d   : > { %v534_v54 = vshrl.u32 %v2842_v60, %v1777_v55  ;;  %v387_v15 = vsel %vm383_vm11, %v1713_v36, %v386_v57  ;;  %v1809_v20 = vadd.s32 %v434_v30, %v430_v21  ;;  %v521_v23 = vshll.u32 %v2854_v43, %v518_v42 }
  0x4e   : > { %v522_v26 = vshrl.u32 %v2848_v45, %v1777_v55  ;;  %vm297_vm4 = vcmp.lt.s32.totalorder %v1785_v61, 0  ;;  %v298_v34 = vsub.s32 0, %v1785_v61  ;;  %v441_v27 = vadd.s32 %v440_v5, %v431_v63 }
  0x4f   : > { %v532_v28 = vor.u32 %v531_v12, %v530_v8  ;;  %v1816_v40 = vadd.s32 %v418_v4, %v409_v62  ;;  %v1818_v41 = vor.u32 %v525_v22, %v524_v3  ;;  %v1820_v31 = vor.u32 %v528_v35, %v527_v53 }
  0x50   : > { %vm539_vm5 = vcmp.lt.s32.totalorder %v1787_v0, 4  ;;  %v512_v36 = vor.u32 8388608, %v511_v13  ;;  %v535_v21 = vor.u32 %v534_v54, %v533_v14  ;;  %vm536_vm6 = vcmp.lt.s32.totalorder %v1787_v0, 1 }
  0x51   : > { %v388_v30 = vsel %vm382_vm12, %v385_v7, %v387_v15  ;;  %v1826_v37 = vor.u32 %v522_v26, %v521_v23  ;;  %v299_v38 = vsel %vm297_vm4, %v298_v34, %v1785_v61  ;;  %v445_v42 = vadd.s32 1, %v441_v27 }
  0x52   : > { %vm538_vm7 = vcmp.lt.s32.totalorder %v1787_v0, 3  ;;  %v545_v46 = vsel %vm539_vm5, %v532_v28, 920167782  ;;  %vm444_vm8 = vc.u32 %v1816_v40, %v1809_v20  ;;  %vm537_vm9 = vcmp.lt.s32.totalorder %v1787_v0, 2 }
  0x53   : > { %v548_v11 = vsel %vm536_vm6, %v1818_v41, %v1820_v31  ;;  %v152_v39 = vadd.s32 24, %v1608_v1  ;;  %v442_v25 = vmul.u32 %v1667_v58, %v388_v30  ;;  %v549_v33 = vsel %vm539_vm5, %v535_v21, 1326507024 }
  0x54   : > { %v1843_v48 = vshll.u32 %v512_v36, 8  ;;  %v300_v50 = vclz %v299_v38  ;;  %v544_v52 = vsel %vm536_vm6, %v1826_v37, %v1818_v41  ;;  %v546_v56 = vsel %vm538_vm7, %v1820_v31, %v545_v46 }
  0x55   : > { %v550_v57 = vsel %vm538_vm7, %v532_v28, %v549_v33  ;;  %v446_v62 = vsel %vm444_vm8, %v445_v42, %v441_v27  ;;  %v161_v12 = vadd.s32 %v1610_v2, %v152_v39  ;;  %v547_v3 = vsel %vm537_vm9, %v544_v52, %v546_v56 }
  0x56   : > { %v551_v58 = vsel %vm537_vm9, %v548_v11, %v550_v57  ;;  %v553_v63 = vand.u32 65535, %v1843_v48  ;;  %v554_v4 = vshrl.u32 %v1843_v48, 16  ;;  %v447_v22 = vadd.s32 %v446_v62, %v442_v25 }
  0x57   : > { %v555_v5 = vand.u32 65535, %v551_v58  ;;  %v556_v8 = vshrl.u32 %v551_v58, 16  ;;  %v1525_v13 = vadd.s32 4294967294, %v300_v50  ;;  %v578_v15 = vshrl.u32 %v547_v3, 16 }
  0x58   : > { %v577_v26 = vand.u32 65535, %v547_v3  ;;  %v169_v34 = vcvt.s32.f32 %v161_v12  ;;  %v448_v27 = vadd.s32 536870912, %v447_v22  ;;  %vm196_vm3 = vcmp.lt.s32.totalorder %v1632_v16, 0 }
  0x59   : > { %v557_v53 = vmul.u32 %v555_v5, %v553_v63  ;;  %v558_v35 = vmul.u32 %v556_v8, %v553_v63  ;;  %v559_v7 = vmul.u32 %v555_v5, %v554_v4  ;;  %v560_v23 = vmul.u32 %v556_v8, %v554_v4 }
  0x5a   : > { %vm1526_vm11 = vcmp.lt.s32.totalorder %v1525_v13, 0  ;;  %v580_v21 = vmul.u32 %v578_v15, %v553_v63  ;;  %v581_v38 = vmul.u32 %v577_v26, %v554_v4  ;;  %v180_v42 = vmul.f32 %v1619_v6, %v169_v34 }
  0x5b   : > { %v561_v14 = vshll.u32 %v558_v35, 16  ;;  %v563_v54 = vshll.u32 %v559_v7, 16  ;;  %v303_v46 = vsel %vm1526_vm11, 0, %v1525_v13  ;;  %v1863_v11 = vshrl.u32 %v448_v27, 30 }
  0x5c   : > { %v579_v39 = vmul.u32 %v577_v26, %v553_v63  ;;  %v562_v33 = vshrl.u32 %v558_v35, 16  ;;  %v582_v52 = vmul.u32 %v578_v15, %v554_v4  ;;  %v583_v56 = vshll.u32 %v580_v21, 16 }
  0x5d   : > { %vm565_vm10 = vc.u32 %v557_v53, %v561_v14  ;;  %v567_v28 = vadd.s32 %v561_v14, %v557_v53  ;;  %v308_v57 = vsub.s32 4294967266, %v303_v46  ;;  %v585_v62 = vshll.u32 %v581_v38, 16 }
  0x5e   : > { %v566_v36 = vsel %vm565_vm10, 1, %v1582_v9  ;;  %v1867_v58 = vadd.f32 %v1626_v10, %v180_v42  ;;  %v450_v5 = vshll.u32 %v1863_v11, 30  ;;  %vm587_vm13 = vc.u32 %v579_v39, %v583_v56 }
  0x5f   : > { %vm569_vm12 = vc.u32 %v567_v28, %v563_v54  ;;  %v568_v30 = vadd.s32 %v566_v36, %v560_v23  ;;  %v288_v8 = vadd.s32 %v1733_v29, %v1747_v44  ;;  %v520_v63 = vshrl.u32 %v2854_v43, %v1777_v55 }
  0x60   : > { %v570_v25 = vsel %vm569_vm12, 1, %v1582_v9  ;;  %v588_v12 = vsel %vm587_vm13, 1, %v1582_v9  ;;  %v589_v3 = vadd.s32 %v583_v56, %v579_v39  ;;  %v304_v53 = vsub.s32 32, %v303_v46 }
  0x61   : > { %v572_v50 = vadd.s32 %v570_v25, %v568_v30  ;;  %v564_v4 = vshrl.u32 %v559_v7, 16  ;;  %v590_v13 = vadd.s32 %v588_v12, %v582_v52  ;;  %v309_v14 = vadd.s32 127, %v308_v57 }
  0x62   : > { %v541_v54 = vsel %vm539_vm5, %v1820_v31, 2102212464  ;;  %v584_v15 = vshrl.u32 %v580_v21, 16  ;;  %vm591_vm14 = vc.u32 %v589_v3, %v585_v62  ;;  %v1878_v23 = vsub.s32 %v447_v22, %v450_v5 }
  0x63   : > { %v573_v35 = vadd.s32 %v572_v50, %v562_v33  ;;  %v592_v29 = vsel %vm591_vm14, 1, %v1582_v9  ;;  %v662_v44 = vand.u32 2139095040, %v1867_v58  ;;  %v153_v55 = vadd.s32 32, %v1608_v1 }
  0x64   : > { %v540_v7 = vsel %vm536_vm6, %v520_v63, %v1826_v37  ;;  %v586_v26 = vshrl.u32 %v581_v38, 16  ;;  %v594_v34 = vadd.s32 %v592_v29, %v590_v13  ;;  %v542_v31 = vsel %vm538_vm7, %v1818_v41, %v541_v54 }
  0x65   : > { %v1889_v27 = vadd.s32 %v573_v35, %v564_v4  ;;  %v1891_v22 = vadd.s32 %v589_v3, %v585_v62  ;;  %v663_v28 = vshrl.u32 %v662_v44, 23  ;;  %v305_v36 = vshll.u32 %v1785_v61, %v303_v46 }
  0x66   : > { %v306_v21 = vshrl.u32 %v288_v8, %v304_v53  ;;  %v310_v30 = vshll.u32 %v309_v14, 23  ;;  %v595_v42 = vadd.s32 %v594_v34, %v584_v15  ;;  %v453_v39 = vsub.s32 0, %v1878_v23 }
  0x67   : > { %v1533_v25 = vadd.s32 4294967169, %v663_v28  ;;  %vm452_vm15 = vcmp.lt.s32.totalorder %v1878_v23, 0  ;;  %v543_v37 = vsel %vm537_vm9, %v540_v7, %v542_v31  ;;  %v162_v41 = vadd.s32 %v1610_v2, %v153_v55 }
  0x68   : > { %v596_v38 = vadd.s32 %v595_v42, %v586_v26  ;;  %vm599_vm0 = vc.u32 %v1889_v27, %v1891_v22  ;;  %v307_v50 = vor.u32 %v306_v21, %v305_v36  ;;  %v311_v61 = vor.u32 4788187, %v310_v30 }
  0x69   : > { %v669_v33 = vadd.s32 1, %v1533_v25  ;;  %v454_v52 = vsel %vm452_vm15, %v453_v39, %v1878_v23  ;;  %v597_v56 = vmul.u32 %v1843_v48, %v543_v37  ;;  %v170_v5 = vcvt.s32.f32 %v162_v41 }
  0x6a   : > { %v600_v46 = vadd.s32 1, %v596_v38  ;;  %v312_v0 = vand.u32 2147483647, %v311_v61  ;;  %v314_v8 = vcvt.s32.f32 %v307_v50  ;;  %v455_v63 = vclz %v454_v52 }
  0x6b   : > { %vm670_vm1 = vcmp.gt.s32.totalorder %v669_v33, 0  ;;  %v2838_v53 = vand.u32 2147483647, %v1867_v58  ;;  %v181_v35 = vmul.f32 %v1619_v6, %v170_v5  ;;  %v154_v39 = vadd.s32 40, %v1608_v1 }
  0x6c   : > { %v601_v57 = vsel %vm599_vm0, %v600_v46, %v596_v38  ;;  %v671_v62 = vsel %vm670_vm1, %v669_v33, 0  ;;  %v315_v13 = vmul.f32 %v314_v8, %v312_v0  ;;  %v1528_v14 = vadd.s32 4294967294, %v455_v63 }
  0x6d   : > { %v673_v12 = vand.u32 31, %v671_v62  ;;  %v602_v3 = vadd.s32 %v601_v57, %v597_v56  ;;  %v666_v15 = vand.u32 8388607, %v2838_v53  ;;  %v1910_v29 = vshrl.u32 %v671_v62, 5 }
  0x6e   : > { %v1921_v31 = vadd.f32 %v1626_v10, %v181_v35  ;;  %vm1529_vm2 = vcmp.lt.s32.totalorder %v1528_v14, 0  ;;  %v316_v25 = vxor.u32 2147483648, %v315_v13  ;;  %v155_v52 = vadd.s32 48, %v1608_v1 }
  0x6f   : > { %v1904_v4 = vsub.s32 32, %v673_v12  ;;  %v685_v54 = vshll.u32 %v2846_v49, %v673_v12  ;;  %v603_v48 = vadd.s32 536870912, %v602_v3  ;;  %v679_v44 = vshll.u32 %v2848_v45, %v673_v12 }
  0x70   : > { %v682_v7 = vshll.u32 %v2839_v47, %v673_v12  ;;  %v676_v28 = vshll.u32 %v2854_v43, %v673_v12  ;;  %v688_v30 = vshll.u32 %v2844_v51, %v673_v12  ;;  %v667_v38 = vor.u32 8388608, %v666_v15 }
  0x71   : > { %v680_v55 = vshrl.u32 %v2839_v47, %v1904_v4  ;;  %v683_v26 = vshrl.u32 %v2846_v49, %v1904_v4  ;;  %v686_v34 = vshrl.u32 %v2844_v51, %v1904_v4  ;;  %v677_v36 = vshrl.u32 %v2848_v45, %v1904_v4 }
  0x72   : > { %v689_v42 = vshrl.u32 %v2842_v60, %v1904_v4  ;;  %v1930_v37 = vshrl.u32 %v603_v48, 30  ;;  %vm694_vm4 = vcmp.lt.s32.totalorder %v1910_v29, 4  ;;  %v458_v50 = vsel %vm1529_vm2, 0, %v1528_v14 }
  0x73   : > { %v687_v21 = vor.u32 %v686_v34, %v685_v54  ;;  %v1933_v41 = vor.u32 %v680_v55, %v679_v44  ;;  %v1935_v33 = vor.u32 %v683_v26, %v682_v7  ;;  %v1938_v61 = vor.u32 %v677_v36, %v676_v28 }
  0x74   : > { %v690_v46 = vor.u32 %v689_v42, %v688_v30  ;;  %vm691_vm5 = vcmp.lt.s32.totalorder %v1910_v29, 1  ;;  %vm693_vm6 = vcmp.lt.s32.totalorder %v1910_v29, 3  ;;  %v817_v57 = vand.u32 2139095040, %v1921_v31 }
  0x75   : > { %v700_v56 = vsel %vm694_vm4, %v687_v21, 920167782  ;;  %vm1948_vm7 = vcmp.le.f32.partialorder %v194_v19, 0.7853982  ;;  %v317_v5 = vsel %vm196_vm3, %v316_v25, %v315_v13  ;;  %v605_v0 = vshll.u32 %v1930_v37, 30 }
  0x76   : > { %v1955_v8 = vshll.u32 %v667_v38, 8  ;;  %v156_v63 = vadd.s32 56, %v1608_v1  ;;  %v463_v12 = vsub.s32 4294967266, %v458_v50  ;;  %vm692_vm8 = vcmp.lt.s32.totalorder %v1910_v29, 2 }
  0x77   : > { %v703_v19 = vsel %vm691_vm5, %v1933_v41, %v1935_v33  ;;  %v163_v35 = vadd.s32 %v1610_v2, %v154_v39  ;;  %v699_v13 = vsel %vm691_vm5, %v1938_v61, %v1933_v41  ;;  %v701_v14 = vsel %vm693_vm6, %v1935_v33, %v700_v56 }
  0x78   : > { %v704_v1 = vsel %vm694_vm4, %v690_v46, 1326507024  ;;  %v1976_v54 = vsel %vm1948_vm7, %v1632_v16, %v317_v5  ;;  %v443_v48 = vadd.s32 %v1809_v20, %v1816_v40  ;;  %v818_v44 = vshrl.u32 %v817_v57, 23 }
  0x79   : > { %v705_v15 = vsel %vm693_vm6, %v687_v21, %v704_v1  ;;  %v459_v55 = vsub.s32 32, %v458_v50  ;;  %v1982_v7 = vsub.s32 %v602_v3, %v605_v0  ;;  %v708_v34 = vand.u32 65535, %v1955_v8 }
  0x7a   : > { %v706_v26 = vsel %vm692_vm8, %v703_v19, %v705_v15  ;;  %v464_v28 = vadd.s32 127, %v463_v12  ;;  %v702_v36 = vsel %vm692_vm8, %v699_v13, %v701_v14  ;;  %v709_v30 = vshrl.u32 %v1955_v8, 16 }
  0x7b   : > { %v710_v42 = vand.u32 65535, %v706_v26  ;;  %v164_v20 = vadd.s32 %v1610_v2, %v155_v52  ;;  %v165_v40 = vadd.s32 %v1610_v2, %v156_v63  ;;  %v711_v21 = vshrl.u32 %v706_v26, 16 }
  0x7c   : > { %v732_v39 = vand.u32 65535, %v702_v36  ;;  %v171_v3 = vcvt.s32.f32 %v163_v35  ;;  %v1994_v25 = vmul.f32 %v1976_v54, %v1976_v54  ;;  %v460_v38 = vshll.u32 %v1878_v23, %v458_v50 }
  0x7d   : > { %v1536_v46 = vadd.s32 4294967169, %v818_v44  ;;  %v461_v56 = vshrl.u32 %v443_v48, %v459_v55  ;;  %v608_v57 = vsub.s32 0, %v1982_v7  ;;  %v1998_v5 = vmul.u32 %v711_v21, %v708_v34 }
  0x7e   : > { %v733_v0 = vshrl.u32 %v702_v36, 16  ;;  %v465_v12 = vshll.u32 %v464_v28, 23  ;;  %vm607_vm9 = vcmp.lt.s32.totalorder %v1982_v7, 0  ;;  %v712_v2 = vmul.u32 %v710_v42, %v708_v34 }
  0x7f   : > { %v2001_v52 = vmul.u32 %v710_v42, %v709_v30  ;;  %v716_v63 = vshll.u32 %v1998_v5, 16  ;;  %v734_v19 = vmul.u32 %v732_v39, %v708_v34  ;;  %v2006_v13 = vmul.u32 %v732_v39, %v709_v30 }
  0x80   : > { %v2004_v35 = vmul.u32 %v733_v0, %v708_v34  ;;  %v172_v23 = vcvt.s32.f32 %v164_v20  ;;  %v173_v50 = vcvt.s32.f32 %v165_v40  ;;  %v318_v14 = vsub.s32 4, %v1772_v32 }
  0x81   : > { %v824_v1 = vadd.s32 1, %v1536_v46  ;;  %v182_v48 = vmul.f32 %v1619_v6, %v171_v3  ;;  %v330_v15 = vmul.f32 -0.00019511016, %v1994_v25  ;;  %v609_v44 = vsel %vm607_vm9, %v608_v57, %v1982_v7 }
  0x82   : > { %v738_v55 = vshll.u32 %v2004_v35, 16  ;;  %v462_v26 = vor.u32 %v461_v56, %v460_v38  ;;  %v466_v28 = vor.u32 4788187, %v465_v12  ;;  %v718_v34 = vshll.u32 %v2001_v52, 16 }
  0x83   : > { %vm720_vm10 = vc.u32 %v712_v2, %v716_v63  ;;  %v722_v36 = vadd.s32 %v716_v63, %v712_v2  ;;  %v740_v42 = vshll.u32 %v2006_v13, 16  ;;  %v183_v40 = vmul.f32 %v1619_v6, %v172_v23 }
  0x84   : > { %vm742_vm11 = vc.u32 %v734_v19, %v738_v55  ;;  %v2015_v20 = vadd.s32 %v738_v55, %v734_v19  ;;  %v319_v39 = vsel %vm196_vm3, %v318_v14, %v1772_v32  ;;  %v610_v3 = vclz %v609_v44 }
  0x85   : > { %vm825_vm12 = vcmp.gt.s32.totalorder %v824_v1, 0  ;;  %v323_v38 = vmul.f32 -0.001358992, %v1994_v25  ;;  %v331_v46 = vadd.f32 0.008332121, %v330_v15  ;;  %v715_v56 = vmul.u32 %v711_v21, %v709_v30 }
  0x86   : > { %v737_v57 = vmul.u32 %v733_v0, %v709_v30  ;;  %v469_v12 = vcvt.s32.f32 %v462_v26  ;;  %v721_v2 = vsel %vm720_vm10, 1, %v1582_v9  ;;  %v743_v63 = vsel %vm742_vm11, 1, %v1582_v9 }
  0x87   : > { %v826_v19 = vsel %vm825_vm12, %v824_v1, 0  ;;  %v467_v55 = vand.u32 2147483647, %v466_v28  ;;  %vm724_vm13 = vc.u32 %v722_v36, %v718_v34  ;;  %vm746_vm14 = vc.u32 %v2015_v20, %v740_v42 }
  0x88   : > { %v828_v32 = vand.u32 31, %v826_v19  ;;  %v321_v23 = vsel %vm1948_vm7, 0, %v319_v39  ;;  %v1531_v14 = vadd.s32 4294967294, %v610_v3  ;;  %v2837_v21 = vand.u32 2147483647, %v1921_v31 }
  0x89   : > { %v2031_v30 = vmul.f32 %v1619_v6, %v173_v50  ;;  %v723_v0 = vadd.s32 %v721_v2, %v715_v56  ;;  %v745_v15 = vadd.s32 %v743_v63, %v737_v57  ;;  %v2036_v1 = vadd.f32 %v1626_v10, %v182_v48 }
  0x8a   : > { %v2033_v44 = vsub.s32 32, %v828_v32  ;;  %v2039_v26 = vadd.f32 %v1626_v10, %v183_v40  ;;  %v725_v28 = vsel %vm724_vm13, 1, %v1582_v9  ;;  %v747_v62 = vsel %vm746_vm14, 1, %v1582_v9 }
  0x8b   : > { %v324_v34 = vadd.f32 0.041655596, %v323_v38  ;;  %v332_v36 = vmul.f32 %v331_v46, %v1994_v25  ;;  %v2044_v39 = vadd.s32 3, %v321_v23  ;;  %v470_v6 = vmul.f32 %v469_v12, %v467_v55 }
  0x8c   : > { %vm1532_vm15 = vcmp.lt.s32.totalorder %v1531_v14, 0  ;;  %v717_v50 = vshrl.u32 %v1998_v5, 16  ;;  %v739_v3 = vshrl.u32 %v2004_v35, 16  ;;  %v821_v48 = vand.u32 8388607, %v2837_v21 }
  0x8d   : > { %v727_v10 = vadd.s32 %v725_v28, %v723_v0  ;;  %v749_v40 = vadd.s32 %v747_v62, %v745_v15  ;;  %v840_v56 = vshll.u32 %v2846_v49, %v828_v32  ;;  %v841_v38 = vshrl.u32 %v2844_v51, %v2033_v44 }
  0x8e   : > { %vm351_vm0 = vcmp.lt.s32.totalorder %v1635_v17, 0  ;;  %v834_v46 = vshll.u32 %v2848_v45, %v828_v32  ;;  %v835_v57 = vshrl.u32 %v2839_v47, %v2033_v44  ;;  %v837_v5 = vshll.u32 %v2839_v47, %v828_v32 }
  0x8f   : > { %v838_v35 = vshrl.u32 %v2846_v49, %v2033_v44  ;;  %v2060_v12 = vshrl.u32 %v826_v19, 5  ;;  %v831_v2 = vshll.u32 %v2854_v43, %v828_v32  ;;  %v832_v63 = vshrl.u32 %v2848_v45, %v2033_v44 }
  0x90   : > { %v843_v55 = vshll.u32 %v2844_v51, %v828_v32  ;;  %v2067_v23 = vsel %vm1532_vm15, 0, %v1531_v14  ;;  %v675_v0 = vshrl.u32 %v2854_v43, %v1904_v4  ;;  %v696_v15 = vsel %vm694_vm4, %v1935_v33, 2102212464 }
  0x91   : > { %v822_v28 = vor.u32 8388608, %v821_v48  ;;  %vm2076_vm1 = vcmp.le.f32.partialorder %v349_v24, 0.7853982  ;;  %v719_v62 = vshrl.u32 %v2001_v52, 16  ;;  %v741_v32 = vshrl.u32 %v2006_v13, 16 }
  0x92   : > { %v842_v14 = vor.u32 %v841_v38, %v840_v56  ;;  %v844_v21 = vshrl.u32 %v2842_v60, %v2033_v44  ;;  %v728_v4 = vadd.s32 %v727_v10, %v717_v50  ;;  %v750_v53 = vadd.s32 %v749_v40, %v739_v3 }
  0x93   : > { %v2084_v47 = vor.u32 %v835_v57, %v834_v46  ;;  %v2086_v33 = vor.u32 %v838_v35, %v837_v5  ;;  %v2088_v48 = vor.u32 %v832_v63, %v831_v2  ;;  %vm846_vm2 = vcmp.lt.s32.totalorder %v2060_v12, 1 }
  0x94   : > { %v845_v24 = vor.u32 %v844_v21, %v843_v55  ;;  %vm849_vm3 = vcmp.lt.s32.totalorder %v2060_v12, 4  ;;  %v471_v52 = vxor.u32 2147483648, %v470_v6  ;;  %v695_v56 = vsel %vm691_vm5, %v675_v0, %v1938_v61 }
  0x95   : > { %v697_v50 = vsel %vm693_vm6, %v1933_v41, %v696_v15  ;;  %vm848_vm4 = vcmp.lt.s32.totalorder %v2060_v12, 3  ;;  %v618_v3 = vsub.s32 4294967266, %v2067_v23  ;;  %v855_v21 = vsel %vm849_vm3, %v842_v14, 920167782 }
  0x96   : > { %v859_v10 = vsel %vm849_vm3, %v845_v24, 1326507024  ;;  %v2104_v40 = vshll.u32 %v822_v28, 8  ;;  %v2109_v61 = vadd.s32 %v2015_v20, %v740_v42  ;;  %v751_v38 = vadd.s32 %v750_v53, %v741_v32 }
  0x97   : > { %vm847_vm5 = vcmp.lt.s32.totalorder %v2060_v12, 2  ;;  %v858_v41 = vsel %vm846_vm2, %v2084_v47, %v2086_v33  ;;  %v2116_v46 = vadd.s32 %v728_v4, %v719_v62  ;;  %v854_v57 = vsel %vm846_vm2, %v2088_v48, %v2084_v47 }
  0x98   : > { %v856_v13 = vsel %vm848_vm4, %v2086_v33, %v855_v21  ;;  %v860_v53 = vsel %vm848_vm4, %v842_v14, %v859_v10  ;;  %v325_v42 = vmul.f32 %v324_v34, %v1994_v25  ;;  %v333_v20 = vadd.f32 -0.16666654, %v332_v36 }
  0x99   : > { %v473_v5 = vsub.s32 4, %v1863_v11  ;;  %v598_v35 = vadd.s32 %v1891_v22, %v1889_v27  ;;  %v472_v2 = vsel %vm351_vm0, %v471_v52, %v470_v6  ;;  %v698_v63 = vsel %vm692_vm8, %v695_v56, %v697_v50 }
  0x9a   : > { %v861_v55 = vsel %vm847_vm5, %v858_v41, %v860_v53  ;;  %v863_v0 = vand.u32 65535, %v2104_v40  ;;  %v614_v15 = vsub.s32 32, %v2067_v23  ;;  %v755_v34 = vadd.s32 1, %v751_v38 }
  0x9b   : > { %v857_v36 = vsel %vm847_vm5, %v854_v57, %v856_v13  ;;  %v864_v28 = vshrl.u32 %v2104_v40, 16  ;;  %v619_v27 = vadd.s32 127, %v618_v3  ;;  %vm754_vm6 = vc.u32 %v2116_v46, %v2109_v61 }
  0x9c   : > { %v865_v22 = vand.u32 65535, %v861_v55  ;;  %v866_v29 = vshrl.u32 %v861_v55, 16  ;;  %v326_v6 = vadd.f32 -0.4999988, %v325_v42  ;;  %v334_v62 = vmul.f32 %v333_v20, %v1994_v25 }
  0x9d   : > { %v2148_v32 = vsel %vm2076_vm1, %v1635_v17, %v472_v2  ;;  %v615_v14 = vshll.u32 %v1982_v7, %v2067_v23  ;;  %v752_v4 = vmul.u32 %v1955_v8, %v698_v63  ;;  %v888_v56 = vshrl.u32 %v857_v36, 16 }
  0x9e   : > { %v867_v24 = vmul.u32 %v865_v22, %v863_v0  ;;  %v868_v52 = vmul.u32 %v866_v29, %v863_v0  ;;  %v616_v50 = vshrl.u32 %v598_v35, %v614_v15  ;;  %v756_v3 = vsel %vm754_vm6, %v755_v34, %v751_v38 }
  0x9f   : > { %v869_v21 = vmul.u32 %v865_v22, %v864_v28  ;;  %v887_v10 = vand.u32 65535, %v857_v36  ;;  %v2156_v41 = vsel %vm351_vm0, %v473_v5, %v1863_v11  ;;  %v620_v57 = vshll.u32 %v619_v27, 23 }
  0xa0   : > { %v870_v13 = vmul.u32 %v866_v29, %v864_v28  ;;  %v871_v53 = vshll.u32 %v868_v52, 16  ;;  %v327_v42 = vmul.f32 %v326_v6, %v1994_v25  ;;  %v2161_v8 = vmul.f32 %v2148_v32, %v2148_v32 }
  0xa1   : > { %v873_v7 = vshll.u32 %v869_v21, 16  ;;  %v972_v23 = vand.u32 2139095040, %v2036_v1  ;;  %v2164_v38 = vadd.s32 %v756_v3, %v752_v4  ;;  %v890_v35 = vmul.u32 %v888_v56, %v863_v0 }
  0xa2   : > { %vm875_vm7 = vc.u32 %v867_v24, %v871_v53  ;;  %v877_v20 = vadd.s32 %v871_v53, %v867_v24  ;;  %v335_v2 = vadd.f32 1.0, %v334_v62  ;;  %v617_v11 = vor.u32 %v616_v50, %v615_v14 }
  0xa3   : > { %v876_v5 = vsel %vm875_vm7, 1, %v1582_v9  ;;  %v891_v63 = vmul.u32 %v887_v10, %v864_v28  ;;  %v478_v55 = vmul.f32 -0.001358992, %v2161_v8  ;;  %v621_v25 = vor.u32 4788187, %v620_v57 }
  0xa4   : > { %v878_v15 = vadd.s32 %v876_v5, %v870_v13  ;;  %v889_v34 = vmul.u32 %v887_v10, %v863_v0  ;;  %v485_v36 = vmul.f32 -0.00019511016, %v2161_v8  ;;  %v872_v27 = vshrl.u32 %v868_v52, 16 }
  0xa5   : > { %vm879_vm8 = vc.u32 %v877_v20, %v873_v7  ;;  %v973_v22 = vshrl.u32 %v972_v23, 23  ;;  %v758_v29 = vadd.s32 536870912, %v2164_v38  ;;  %v892_v4 = vmul.u32 %v888_v56, %v864_v28 }
  0xa6   : > { %v880_v6 = vsel %vm879_vm8, 1, %v1582_v9  ;;  %v893_v62 = vshll.u32 %v890_v35, 16  ;;  %v624_v14 = vcvt.s32.f32 %v617_v11  ;;  %v830_v24 = vshrl.u32 %v2854_v43, %v2033_v44 }
  0xa7   : > { %v882_v50 = vadd.s32 %v880_v6, %v878_v15  ;;  %v895_v3 = vshll.u32 %v891_v63, 16  ;;  %v622_v57 = vand.u32 2147483647, %v621_v25  ;;  %v851_v0 = vsel %vm849_vm3, %v2086_v33, 2102212464 }
  0xa8   : > { %vm897_vm9 = vc.u32 %v889_v34, %v893_v62  ;;  %v899_v52 = vadd.s32 %v893_v62, %v889_v34  ;;  %v874_v10 = vshrl.u32 %v869_v21, 16  ;;  %v1539_v7 = vadd.s32 4294967169, %v973_v22 }
  0xa9   : > { %v883_v13 = vadd.s32 %v882_v50, %v872_v27  ;;  %v898_v53 = vsel %vm897_vm9, 1, %v1582_v9  ;;  %v2177_v28 = vshrl.u32 %v758_v29, 30  ;;  %v894_v56 = vshrl.u32 %v890_v35, 16 }
  0xaa   : > { %v900_v23 = vadd.s32 %v898_v53, %v892_v4  ;;  %vm901_vm10 = vc.u32 %v899_v52, %v895_v3  ;;  %v850_v44 = vsel %vm846_vm2, %v830_v24, %v2088_v48  ;;  %v852_v33 = vsel %vm848_vm4, %v2084_v47, %v851_v0 }
  0xab   : > { %v902_v20 = vsel %vm901_vm10, 1, %v1582_v9  ;;  %v979_v21 = vadd.s32 1, %v1539_v7  ;;  %v479_v11 = vadd.f32 0.041655596, %v478_v55  ;;  %v486_v5 = vadd.f32 0.008332121, %v485_v36 }
  0xac   : > { %v896_v25 = vshrl.u32 %v891_v63, 16  ;;  %v904_v15 = vadd.s32 %v902_v20, %v900_v23  ;;  %v625_v34 = vmul.f32 %v624_v14, %v622_v57  ;;  %v2186_v27 = vadd.s32 %v883_v13, %v874_v10 }
  0xad   : > { %v2188_v35 = vadd.s32 %v899_v52, %v895_v3  ;;  %vm980_vm11 = vcmp.gt.s32.totalorder %v979_v21, 0  ;;  %v760_v22 = vshll.u32 %v2177_v28, 30  ;;  %v853_v48 = vsel %vm847_vm5, %v850_v44, %v852_v33 }
  0xae   : > { %v905_v29 = vadd.s32 %v904_v15, %v894_v56  ;;  %v981_v47 = vsel %vm980_vm11, %v979_v21, 0  ;;  %v2194_v6 = vand.u32 3, %v2044_v39  ;;  %vm506_vm12 = vcmp.lt.s32.totalorder %v1638_v18, 0 }
  0xaf   : > { %v2841_v63 = vand.u32 2147483647, %v2036_v1  ;;  %v983_v55 = vand.u32 31, %v981_v47  ;;  %v2198_v36 = vadd.f32 1.0, %v327_v42  ;;  %v2201_v4 = vmul.f32 %v335_v2, %v1976_v54 }
  0xb0   : > { %v476_v12 = vsel %vm2076_vm1, 0, %v2156_v41  ;;  %v906_v62 = vadd.s32 %v905_v29, %v896_v25  ;;  %v480_v14 = vmul.f32 %v479_v11, %v2161_v8  ;;  %vm2209_vm13 = vcmp.le.f32.partialorder %v504_v59, 0.7853982 }
  0xb1   : > { %v907_v24 = vmul.u32 %v2104_v40, %v853_v48  ;;  %vm909_vm14 = vc.u32 %v2186_v27, %v2188_v35  ;;  %v2216_v54 = vsub.s32 32, %v983_v55  ;;  %v487_v42 = vmul.f32 %v486_v5, %v2161_v8 }
  0xb2   : > { %v626_v19 = vxor.u32 2147483648, %v625_v34  ;;  %v2220_v41 = vsub.s32 %v2164_v38, %v760_v22  ;;  %v910_v2 = vadd.s32 1, %v906_v62  ;;  %vm344_vm15 = vcmp.eq.s32.totalorder %v2194_v6, 2 }
  0xb3   : > { %v976_v59 = vand.u32 8388607, %v2841_v63  ;;  %v2225_v50 = vshrl.u32 %v981_v47, 5  ;;  %v986_v40 = vshll.u32 %v2854_v43, %v983_v55  ;;  %v995_v3 = vshll.u32 %v2846_v49, %v983_v55 }
  0xb4   : > { %vm341_vm0 = vcmp.eq.s32.totalorder %v2194_v6, 0  ;;  %v911_v57 = vsel %vm909_vm14, %v910_v2, %v906_v62  ;;  %v987_v0 = vshrl.u32 %v2848_v45, %v2216_v54  ;;  %v989_v38 = vshll.u32 %v2848_v45, %v983_v55 }
  0xb5   : > { %v996_v52 = vshrl.u32 %v2844_v51, %v2216_v54  ;;  %v912_v10 = vadd.s32 %v911_v57, %v907_v24  ;;  %v2862_v13 = vmov 2131351028   ;;  %v993_v56 = vshrl.u32 %v2846_v49, %v2216_v54 }
  0xb6   : > { %v990_v53 = vshrl.u32 %v2862_v13, %v2216_v54  ;;  %v992_v7 = vshll.u32 %v2862_v13, %v983_v55  ;;  %v345_v23 = vxor.u32 2147483648, %v2198_v36  ;;  %v488_v44 = vadd.f32 -0.16666654, %v487_v42 }
  0xb7   : > { %v763_v33 = vsub.s32 0, %v2220_v41  ;;  %v998_v20 = vshll.u32 %v2844_v51, %v983_v55  ;;  %v913_v21 = vadd.s32 536870912, %v912_v10  ;;  %v977_v11 = vor.u32 8388608, %v976_v59 }
  0xb8   : > { %v997_v5 = vor.u32 %v996_v52, %v995_v3  ;;  %v999_v25 = vshrl.u32 %v2842_v60, %v2216_v54  ;;  %v481_v15 = vadd.f32 -0.4999988, %v480_v14  ;;  %v627_v22 = vsel %vm506_vm12, %v626_v19, %v625_v34 }
  0xb9   : > { %vm762_vm1 = vcmp.lt.s32.totalorder %v2220_v41, 0  ;;  %v2248_v48 = vor.u32 %v987_v0, %v986_v40  ;;  %vm340_vm2 = vcmp.lt.s32.totalorder %v2194_v6, 2  ;;  %v2251_v29 = vshrl.u32 %v913_v21, 30 }
  0xba   : > { %v2253_v47 = vor.u32 %v990_v53, %v989_v38  ;;  %v2255_v55 = vor.u32 %v993_v56, %v992_v7  ;;  %vm1004_vm3 = vcmp.lt.s32.totalorder %v2225_v50, 4  ;;  %v342_v62 = vxor.u32 2147483648, %v2201_v4 }
  0xbb   : > { %v1000_v14 = vor.u32 %v999_v25, %v998_v20  ;;  %vm1001_vm4 = vcmp.lt.s32.totalorder %v2225_v50, 1  ;;  %vm1003_vm5 = vcmp.lt.s32.totalorder %v2225_v50, 3  ;;  %v489_v34 = vmul.f32 %v488_v44, %v2161_v8 }
  0xbc   : > { %v764_v24 = vsel %vm762_vm1, %v763_v33, %v2220_v41  ;;  %v1010_v42 = vsel %vm1004_vm3, %v997_v5, 920167782  ;;  %v2265_v19 = vshll.u32 %v977_v11, 8  ;;  %v482_v2 = vmul.f32 %v481_v15, %v2161_v8 }
  0xbd   : > { %v493_v59 = vadd.s32 3, %v476_v12  ;;  %v2271_v40 = vsel %vm2209_vm13, %v1638_v18, %v627_v22  ;;  %vm1002_vm6 = vcmp.lt.s32.totalorder %v2225_v50, 2  ;;  %v915_v3 = vshll.u32 %v2251_v29, 30 }
  0xbe   : > { %v1009_v57 = vsel %vm1001_vm4, %v2248_v48, %v2253_v47  ;;  %v1011_v0 = vsel %vm1003_vm5, %v2255_v55, %v1010_v42  ;;  %v1013_v8 = vsel %vm1001_vm4, %v2253_v47, %v2255_v55  ;;  %v346_v12 = vsel %vm344_vm15, %v345_v23, %v2201_v4 }
  0xbf   : > { %v628_v38 = vsub.s32 4, %v1930_v37  ;;  %v765_v52 = vclz %v764_v24  ;;  %v1014_v53 = vsel %vm1004_vm3, %v1000_v14, 1326507024  ;;  %v343_v7 = vsel %vm341_vm0, %v2198_v36, %v342_v62 }
  0xc0   : > { %v490_v56 = vadd.f32 1.0, %v489_v34  ;;  %v1015_v44 = vsel %vm1003_vm5, %v997_v5, %v1014_v53  ;;  %v1018_v33 = vand.u32 65535, %v2265_v19  ;;  %v2300_v20 = vmul.f32 %v2271_v40, %v2271_v40 }
  0xc1   : > { %v1012_v4 = vsel %vm1002_vm6, %v1009_v57, %v1011_v0  ;;  %v1016_v23 = vsel %vm1002_vm6, %v1013_v8, %v1015_v44  ;;  %v1019_v21 = vshrl.u32 %v2265_v19, 16  ;;  %v2307_v11 = vadd.f32 1.0, %v482_v2 }
  0xc2   : > { %v2309_v36 = vsub.s32 %v912_v10, %v915_v3  ;;  %v1020_v25 = vand.u32 65535, %v1016_v23  ;;  %v1021_v5 = vshrl.u32 %v1016_v23, 16  ;;  %v2311_v15 = vand.u32 3, %v493_v59 }
  0xc3   : > { %v2316_v22 = vsel %vm506_vm12, %v628_v38, %v1930_v37  ;;  %v633_v62 = vmul.f32 -0.001358992, %v2300_v20  ;;  %v1534_v14 = vadd.s32 4294967294, %v765_v52  ;;  %v1042_v42 = vand.u32 65535, %v1012_v4 }
  0xc4   : > { %v1022_v34 = vmul.u32 %v1020_v25, %v1018_v33  ;;  %v1023_v24 = vmul.u32 %v1021_v5, %v1018_v33  ;;  %v1043_v57 = vshrl.u32 %v1012_v4, 16  ;;  %v2321_v10 = vsel %vm340_vm2, %v343_v7, %v346_v12 }
  0xc5   : > { %v2324_v2 = vmul.f32 %v490_v56, %v2148_v32  ;;  %v640_v59 = vmul.f32 -0.00019511016, %v2300_v20  ;;  %v1024_v3 = vmul.u32 %v1020_v25, %v1019_v21  ;;  %v500_v37 = vxor.u32 2147483648, %v2307_v11 }
  0xc6   : > { %v918_v8 = vsub.s32 0, %v2309_v36  ;;  %v1026_v38 = vshll.u32 %v1023_v24, 16  ;;  %v634_v52 = vadd.f32 0.041655596, %v633_v62  ;;  %vm1535_vm7 = vcmp.lt.s32.totalorder %v1534_v14, 0 }
  0xc7   : > { %vm917_vm8 = vcmp.lt.s32.totalorder %v2309_v36, 0  ;;  %v1025_v6 = vmul.u32 %v1021_v5, %v1019_v21  ;;  %vm499_vm9 = vcmp.eq.s32.totalorder %v2311_v15, 2  ;;  %v1045_v32 = vmul.u32 %v1043_v57, %v1018_v33 }
  0xc8   : > { %vm1030_vm10 = vc.u32 %v1022_v34, %v1026_v38  ;;  %v1046_v12 = vmul.u32 %v1042_v42, %v1019_v21  ;;  %v1127_v53 = vand.u32 2139095040, %v2039_v26  ;;  %vm496_vm11 = vcmp.eq.s32.totalorder %v2311_v15, 0 }
  0xc9   : > { %v497_v7 = vxor.u32 2147483648, %v2324_v2  ;;  %v641_v56 = vadd.f32 0.008332121, %v640_v59  ;;  %v753_v44 = vadd.s32 %v2109_v61, %v2116_v46  ;;  %v1028_v4 = vshll.u32 %v1024_v3, 16 }
  0xca   : > { %v2339_v23 = vsel %vm1535_vm7, 0, %v1534_v14  ;;  %v919_v25 = vsel %vm917_vm8, %v918_v8, %v2309_v36  ;;  %v1031_v5 = vsel %vm1030_vm10, 1, %v1582_v9  ;;  %v1044_v62 = vmul.u32 %v1042_v42, %v1018_v33 }
  0xcb   : > { %v635_v63 = vmul.f32 %v634_v52, %v2300_v20  ;;  %v985_v60 = vshrl.u32 %v2854_v43, %v2216_v54  ;;  %v1032_v51 = vadd.s32 %v1026_v38, %v1022_v34  ;;  %v1033_v49 = vadd.s32 %v1031_v5, %v1025_v6 }
  0xcc   : > { %v1047_v45 = vmul.u32 %v1043_v57, %v1019_v21  ;;  %v1048_v59 = vshll.u32 %v1045_v32, 16  ;;  %v1050_v0 = vshll.u32 %v1046_v12, 16  ;;  %v1128_v18 = vshrl.u32 %v1127_v53, 23 }
  0xcd   : > { %v773_v61 = vsub.s32 4294967266, %v2339_v23  ;;  %v920_v46 = vclz %v919_v25  ;;  %v1027_v14 = vshrl.u32 %v1023_v24, 16  ;;  %vm1034_vm12 = vc.u32 %v1032_v51, %v1028_v4 }
  0xce   : > { %vm337_vm14 = vweird.f32 %v1632_v16  ;;  %vm495_vm15 = vcmp.lt.s32.totalorder %v2311_v15, 2  ;;  %v1006_v33 = vsel %vm1004_vm3, %v2255_v55, 2102212464  ;;  %v1035_v54 = vsel %vm1034_vm12, 1, %v1582_v9 }
  0xcf   : > { %vm1052_vm0 = vc.u32 %v1044_v62, %v1048_v59  ;;  %v1054_v21 = vadd.s32 %v1048_v59, %v1044_v62  ;;  %v1005_v34 = vsel %vm1001_vm4, %v985_v60, %v2248_v48  ;;  %v1029_v42 = vshrl.u32 %v1024_v3, 16 }
  0xd0   : > { %v1037_v57 = vadd.s32 %v1035_v54, %v1033_v49  ;;  %v1053_v51 = vsel %vm1052_vm0, 1, %v1582_v9  ;;  %v1049_v24 = vshrl.u32 %v1045_v32, 16  ;;  %v1542_v38 = vadd.s32 4294967169, %v1128_v18 }
  0xd1   : > { %v1055_v8 = vadd.s32 %v1053_v51, %v1047_v45  ;;  %vm1056_vm1 = vc.u32 %v1054_v21, %v1050_v0  ;;  %v1537_v52 = vadd.s32 4294967294, %v920_v46  ;;  %v1007_v55 = vsel %vm1003_vm5, %v2253_v47, %v1006_v33 }
  0xd2   : > { %v1038_v6 = vadd.s32 %v1037_v57, %v1027_v14  ;;  %v1057_v53 = vsel %vm1056_vm1, 1, %v1582_v9  ;;  %v769_v4 = vsub.s32 32, %v2339_v23  ;;  %v1051_v25 = vshrl.u32 %v1046_v12, 16 }
  0xd3   : > { %v1059_v60 = vadd.s32 %v1057_v53, %v1055_v8  ;;  %v1134_v48 = vadd.s32 1, %v1542_v38  ;;  %v501_v49 = vsel %vm499_vm9, %v500_v37, %v2324_v2  ;;  %v774_v45 = vadd.s32 127, %v773_v61 }
  0xd4   : > { %v2365_v3 = vadd.s32 %v1038_v6, %v1029_v42  ;;  %v2367_v18 = vadd.s32 %v1054_v21, %v1050_v0  ;;  %v498_v47 = vsel %vm496_vm11, %v2307_v11, %v497_v7  ;;  %v1008_v32 = vsel %vm1002_vm6, %v1005_v34, %v1007_v55 }
  0xd5   : > { %v1060_v5 = vadd.s32 %v1059_v60, %v1049_v24  ;;  %vm1135_vm2 = vcmp.gt.s32.totalorder %v1134_v48, 0  ;;  %v636_v12 = vadd.f32 -0.4999988, %v635_v63  ;;  %v642_v62 = vmul.f32 %v641_v56, %v2300_v20  ;;  %v1567_v63 = vld [vmem:[%s2834_s0 + $0x1] ss:$0 sm:$0xff] }
  0xd6   : > { %vm1538_vm3 = vcmp.lt.s32.totalorder %v1537_v52, 0  ;;  %v1136_v59 = vsel %vm1135_vm2, %v1134_v48, 0  ;;  %v770_v2 = vshll.u32 %v2220_v41, %v2339_v23  ;;  %v771_v37 = vshrl.u32 %v753_v44, %v769_v4 }
  0xd7   : > { %v1061_v0 = vadd.s32 %v1060_v5, %v1051_v25  ;;  %v1138_v61 = vand.u32 31, %v1136_v59  ;;  %v775_v46 = vshll.u32 %v774_v45, 23  ;;  %v1062_v14 = vmul.u32 %v2265_v19, %v1008_v32 }
  0xd8   : > { %vm1064_vm4 = vc.u32 %v2365_v3, %v2367_v18  ;;  %v2853_v50 = vand.u32 2147483647, %v2039_v26  ;;  %v2385_v11 = vadd.f32 %v1567_v63, %v2031_v30  ;;  %v2387_v7 = vsel %vm1538_vm3, 0, %v1537_v52 }
  0xd9   : > { %v1065_v41 = vadd.s32 1, %v1061_v0  ;;  %v2392_v56 = vsel %vm337_vm14, nan, %v2321_v10  ;;  %v2396_v19 = vsel %vm495_vm15, %v498_v47, %v501_v49  ;;  %v2863_v44 = vsel %vm2209_vm13, 0, %v2316_v22 }
  0xda   : > { %v648_v23 = vadd.s32 3, %v2863_v44  ;;  %v2402_v33 = vsub.s32 32, %v1138_v61  ;;  %v637_v30 = vmul.f32 %v636_v12, %v2300_v20  ;;  %v643_v54 = vadd.f32 -0.16666654, %v642_v62 }
  0xdb   : > { %v772_v21 = vor.u32 %v771_v37, %v770_v2  ;;  %v1066_v34 = vsel %vm1064_vm4, %v1065_v41, %v1061_v0  ;;  %v776_v42 = vor.u32 4788187, %v775_v46  ;;  %v928_v16 = vsub.s32 4294967266, %v2387_v7 }
  0xdc   : > { %v1067_v10 = vadd.s32 %v1066_v34, %v1062_v14  ;;  %v1131_v15 = vand.u32 8388607, %v2853_v50  ;;  %v2408_v57 = vshrl.u32 %v1136_v59, 5  ;;  %v2864_v39 = vmov 2475754826  }
  0xdd   : > { %v1144_v51 = vshll.u32 %v2864_v39, %v1138_v61  ;;  %v1147_v22 = vshll.u32 %v2862_v13, %v1138_v61  ;;  %v2865_v24 = vmov 2102212464   ;;  %v1145_v52 = vshrl.u32 %v2862_v13, %v2402_v33 }
  0xde   : > { %v1150_v8 = vshll.u32 %v2865_v24, %v1138_v61  ;;  %v1068_v38 = vadd.s32 536870912, %v1067_v10  ;;  %v1148_v55 = vshrl.u32 %v2865_v24, %v2402_v33  ;;  %v2866_v6 = vmov 920167782  }
  0xdf   : > { %v1151_v53 = vshrl.u32 %v2866_v6, %v2402_v33  ;;  %v1141_v4 = vshll.u32 %v2854_v43, %v1138_v61  ;;  %v1142_v25 = vshrl.u32 %v2864_v39, %v2402_v33  ;;  %v1153_v60 = vshll.u32 %v2866_v6, %v1138_v61 }
  0xe0   : > { %v2867_v48 = vmov 1326507024   ;;  %v644_v45 = vmul.f32 %v643_v54, %v2300_v20  ;;  %v779_v47 = vcvt.s32.f32 %v772_v21  ;;  %v2426_v32 = vshrl.u32 %v1068_v38, 30 }
  0xe1   : > { %v1154_v49 = vshrl.u32 %v2867_v48, %v2402_v33  ;;  %v1132_v5 = vor.u32 8388608, %v1131_v15  ;;  %v777_v12 = vand.u32 2147483647, %v776_v42  ;;  %v908_v62 = vadd.s32 %v2188_v35, %v2186_v27 }
  0xe2   : > { %v924_v59 = vsub.s32 32, %v2387_v7  ;;  %v1152_v2 = vor.u32 %v1151_v53, %v1150_v8  ;;  %v1070_v37 = vshll.u32 %v2426_v32, 30  ;;  %v2432_v0 = vor.u32 %v1145_v52, %v1144_v51 }
  0xe3   : > { %v2434_v61 = vor.u32 %v1148_v55, %v1147_v22  ;;  %vm1159_vm13 = vcmp.lt.s32.totalorder %v2408_v57, 4  ;;  %v929_v20 = vadd.s32 127, %v928_v16  ;;  %v2437_v46 = vor.u32 %v1142_v25, %v1141_v4 }
  0xe4   : > { %v1155_v14 = vor.u32 %v1154_v49, %v1153_v60  ;;  %vm1156_vm5 = vcmp.lt.s32.totalorder %v2408_v57, 1  ;;  %v2440_v63 = vadd.f32 1.0, %v637_v30  ;;  %v645_v27 = vadd.f32 1.0, %v644_v45 }
  0xe5   : > { %vm661_vm6 = vcmp.lt.s32.totalorder %v1867_v58, 0  ;;  %v2443_v35 = vsub.s32 %v1067_v10, %v1070_v37  ;;  %v2445_v41 = vshll.u32 %v1132_v5, 8  ;;  %v780_v44 = vmul.f32 %v779_v47, %v777_v12 }
  0xe6   : > { %v925_v54 = vshll.u32 %v2309_v36, %v2387_v7  ;;  %vm1158_vm7 = vcmp.lt.s32.totalorder %v2408_v57, 3  ;;  %v1165_v21 = vsel %vm1159_vm13, %v1152_v2, 920167782  ;;  %vm1157_vm9 = vcmp.lt.s32.totalorder %v2408_v57, 2 }
  0xe7   : > { %vm1072_vm8 = vcmp.lt.s32.totalorder %v2443_v35, 0  ;;  %v1073_v30 = vsub.s32 0, %v2443_v35  ;;  %v1168_v34 = vsel %vm1156_vm5, %v2432_v0, %v2434_v61  ;;  %v926_v42 = vshrl.u32 %v908_v62, %v924_v59 }
  0xe8   : > { %v930_v16 = vshll.u32 %v929_v20, 23  ;;  %v1164_v36 = vsel %vm1156_vm5, %v2437_v46, %v2432_v0  ;;  %v1169_v7 = vsel %vm1159_vm13, %v1155_v14, 1326507024  ;;  %v1166_v15 = vsel %vm1158_vm7, %v2434_v61, %v1165_v21 }
  0xe9   : > { %v1074_v10 = vsel %vm1072_vm8, %v1073_v30, %v2443_v35  ;;  %v1170_v51 = vsel %vm1158_vm7, %v1152_v2, %v1169_v7  ;;  %v1173_v22 = vand.u32 65535, %v2445_v41  ;;  %v1174_v52 = vshrl.u32 %v2445_v41, 16 }
  0xea   : > { %v1075_v8 = vclz %v1074_v10  ;;  %v1171_v38 = vsel %vm1157_vm9, %v1168_v34, %v1170_v51  ;;  %v1282_v55 = vand.u32 2139095040, %v2385_v11  ;;  %v2476_v53 = vand.u32 3, %v648_v23 }
  0xeb   : > { %v783_v4 = vsub.s32 4, %v2177_v28  ;;  %v1175_v25 = vand.u32 65535, %v1171_v38  ;;  %v1176_v60 = vshrl.u32 %v1171_v38, 16  ;;  %v781_v49 = vxor.u32 2147483648, %v780_v44 }
  0xec   : > { %v2479_v45 = vor.u32 %v926_v42, %v925_v54  ;;  %v1540_v47 = vadd.s32 4294967294, %v1075_v8  ;;  %v1167_v5 = vsel %vm1157_vm9, %v1164_v36, %v1166_v15  ;;  %v2484_v12 = vmul.f32 %v645_v27, %v2271_v40 }
  0xed   : > { %v2486_v62 = vor.u32 4788187, %v930_v16  ;;  %v1178_v59 = vmul.u32 %v1176_v60, %v1173_v22  ;;  %v1197_v2 = vand.u32 65535, %v1167_v5  ;;  %v655_v23 = vxor.u32 2147483648, %v2440_v63 }
  0xee   : > { %vm1541_vm10 = vcmp.lt.s32.totalorder %v1540_v47, 0  ;;  %v1179_v37 = vmul.u32 %v1175_v25, %v1174_v52  ;;  %v1283_v20 = vshrl.u32 %v1282_v55, 23  ;;  %v2492_v14 = vsel %vm661_vm6, %v783_v4, %v2177_v28 }
  0xef   : > { %v1078_v54 = vsel %vm1541_vm10, 0, %v1540_v47  ;;  %v1177_v21 = vmul.u32 %v1175_v25, %v1173_v22  ;;  %v1198_v30 = vshrl.u32 %v1167_v5, 16  ;;  %v2496_v40 = vsel %vm661_vm6, %v781_v49, %v780_v44 }
  0xf0   : > { %v934_v27 = vcvt.s32.f32 %v2479_v45  ;;  %v1083_v34 = vsub.s32 4294967266, %v1078_v54  ;;  %v1181_v42 = vshll.u32 %v1178_v59, 16  ;;  %v932_v16 = vand.u32 2147483647, %v2486_v62 }
  0xf1   : > { %v1180_v36 = vmul.u32 %v1176_v60, %v1174_v52  ;;  %v1201_v7 = vmul.u32 %v1197_v2, %v1174_v52  ;;  %v2852_v10 = vand.u32 2147483647, %v2385_v11  ;;  %v1063_v28 = vadd.s32 %v2367_v18, %v2365_v3 }
  0xf2   : > { %v1183_v15 = vshll.u32 %v1179_v37, 16  ;;  %v1199_v51 = vmul.u32 %v1197_v2, %v1173_v22  ;;  %v1545_v8 = vadd.s32 4294967169, %v1283_v20  ;;  %vm654_vm11 = vcmp.eq.s32.totalorder %v2476_v53, 2 }
  0xf3   : > { %v1079_v44 = vsub.s32 32, %v1078_v54  ;;  %vm1185_vm12 = vc.u32 %v1177_v21, %v1181_v42  ;;  %v1187_v38 = vadd.s32 %v1181_v42, %v1177_v21  ;;  %v1200_v55 = vmul.u32 %v1198_v30, %v1173_v22 }
  0xf4   : > { %v2868_v4 = vand.u32 2147483647, %v1867_v58  ;;  %v1084_v60 = vadd.s32 127, %v1083_v34  ;;  %v1182_v49 = vshrl.u32 %v1178_v59, 16  ;;  %v1186_v47 = vsel %vm1185_vm12, 1, %v1582_v9 }
  0xf5   : > { %v1202_v3 = vmul.u32 %v1198_v30, %v1174_v52  ;;  %v1188_v18 = vadd.s32 %v1186_v47, %v1180_v36  ;;  %vm1189_vm15 = vc.u32 %v1187_v38, %v1183_v15  ;;  %v1203_v5 = vshll.u32 %v1200_v55, 16 }
  0xf6   : > { %vm2506_vm14 = vcmp.le.f32.partialorder %v2868_v4, 0.7853982  ;;  %v1205_v62 = vshll.u32 %v1201_v7, 16  ;;  %v1080_v2 = vshll.u32 %v2443_v35, %v1078_v54  ;;  %v1140_v22 = vshrl.u32 %v2854_v43, %v2402_v33 }
  0xf7   : > { %v1161_v20 = vsel %vm1159_vm13, %v2434_v61, 2102212464  ;;  %v1190_v21 = vsel %vm1189_vm15, 1, %v1582_v9  ;;  %v1081_v34 = vshrl.u32 %v1063_v28, %v1079_v44  ;;  %vm1207_vm0 = vc.u32 %v1199_v51, %v1203_v5 }
  0xf8   : > { %v1192_v59 = vadd.s32 %v1190_v21, %v1188_v18  ;;  %v1209_v42 = vadd.s32 %v1203_v5, %v1199_v51  ;;  %v1085_v52 = vshll.u32 %v1084_v60, 23  ;;  %v1184_v30 = vshrl.u32 %v1179_v37, 16 }
  0xf9   : > { %v1208_v36 = vsel %vm1207_vm0, 1, %v1582_v9  ;;  %v1289_v15 = vadd.s32 1, %v1545_v8  ;;  %v1204_v35 = vshrl.u32 %v1200_v55, 16  ;;  %v1160_v33 = vsel %vm1156_vm5, %v1140_v22, %v2437_v46 }
  0xfa   : > { %v1193_v38 = vadd.s32 %v1192_v59, %v1182_v49  ;;  %v1210_v54 = vadd.s32 %v1208_v36, %v1202_v3  ;;  %vm1211_vm1 = vc.u32 %v1209_v42, %v1205_v62  ;;  %v1162_v61 = vsel %vm1158_vm7, %v2432_v0, %v1161_v20 }
  0xfb   : > { %v1212_v28 = vsel %vm1211_vm1, 1, %v1582_v9  ;;  %vm1290_vm2 = vcmp.gt.s32.totalorder %v1289_v15, 0  ;;  %v1082_v51 = vor.u32 %v1081_v34, %v1080_v2  ;;  %v1206_v37 = vshrl.u32 %v1201_v7, 16 }
  0xfc   : > { %v1214_v44 = vadd.s32 %v1212_v28, %v1210_v54  ;;  %v1291_v4 = vsel %vm1290_vm2, %v1289_v15, 0  ;;  %v1086_v8 = vor.u32 4788187, %v1085_v52  ;;  %v2526_v60 = vadd.s32 %v1193_v38, %v1184_v30 }
  0xfd   : > { %v2528_v55 = vadd.s32 %v1209_v42, %v1205_v62  ;;  %v1293_v49 = vand.u32 31, %v1291_v4  ;;  %vm651_vm3 = vcmp.eq.s32.totalorder %v2476_v53, 0  ;;  %vm816_vm4 = vcmp.lt.s32.totalorder %v1921_v31, 0 }
  0xfe   : > { %v1163_v0 = vsel %vm1157_vm9, %v1160_v33, %v1162_v61  ;;  %v1215_v46 = vadd.s32 %v1214_v44, %v1204_v35  ;;  %v652_v47 = vxor.u32 2147483648, %v2484_v12  ;;  %v2540_v7 = vsel %vm654_vm11, %v655_v23, %v2484_v12 }
  0xff   : > { %v786_v3 = vsel %vm2506_vm14, 0, %v2492_v14  ;;  %v2545_v18 = vsub.s32 32, %v1293_v49  ;;  %v2551_v57 = vsel %vm2506_vm14, %v1867_v58, %v2496_v40  ;;  %v935_v5 = vmul.f32 %v934_v27, %v932_v16 }
 0x100   : > { %v1216_v62 = vadd.s32 %v1215_v46, %v1206_v37  ;;  %v1286_v12 = vand.u32 8388607, %v2852_v10  ;;  %v1087_v23 = vand.u32 2147483647, %v1086_v8  ;;  %v1089_v2 = vcvt.s32.f32 %v1082_v51 }
 0x101   : > { %v1217_v22 = vmul.u32 %v2445_v41, %v1163_v0  ;;  %vm1219_vm13 = vc.u32 %v2526_v60, %v2528_v55  ;;  %v2871_v14 = vand.u32 2147483647, %v1921_v31  ;;  %v1305_v45 = vshll.u32 %v2865_v24, %v1293_v49 }
 0x102   : > { %v1220_v40 = vadd.s32 1, %v1216_v62  ;;  %v1306_v27 = vshrl.u32 %v2866_v6, %v2545_v18  ;;  %v1308_v16 = vshll.u32 %v2866_v6, %v1293_v49  ;;  %v1299_v20 = vshll.u32 %v2864_v39, %v1293_v49 }
 0x103   : > { %vm2562_vm5 = vcmp.le.f32.partialorder %v2871_v14, 0.7853982  ;;  %v1300_v41 = vshrl.u32 %v2862_v13, %v2545_v18  ;;  %v1302_v21 = vshll.u32 %v2862_v13, %v1293_v49  ;;  %v1303_v34 = vshrl.u32 %v2865_v24, %v2545_v18 }
 0x104   : > { %vm650_vm6 = vcmp.lt.s32.totalorder %v2476_v53, 2  ;;  %v2579_v59 = vmul.f32 %v2551_v57, %v2551_v57  ;;  %v1221_v42 = vsel %vm1219_vm13, %v1220_v40, %v1216_v62  ;;  %v2581_v52 = vshrl.u32 %v1291_v4, 5 }
 0x105   : > { %v1309_v6 = vshrl.u32 %v2867_v48, %v2545_v18  ;;  %v936_v30 = vxor.u32 2147483648, %v935_v5  ;;  %v1222_v36 = vadd.s32 %v1221_v42, %v1217_v22  ;;  %v1296_v15 = vshll.u32 %v2854_v43, %v1293_v49 }
 0x106   : > { %v1297_v13 = vshrl.u32 %v2864_v39, %v2545_v18  ;;  %v1090_v24 = vmul.f32 %v1089_v2, %v1087_v23  ;;  %v1287_v38 = vor.u32 8388608, %v1286_v12  ;;  %v1307_v35 = vor.u32 %v1306_v27, %v1305_v45 }
 0x107   : > { %v1310_v54 = vor.u32 %v1309_v6, %v1308_v16  ;;  %v653_v33 = vsel %vm651_vm3, %v2440_v63, %v652_v47  ;;  %v1223_v61 = vadd.s32 536870912, %v1222_v36  ;;  %v2591_v28 = vor.u32 %v1300_v41, %v1299_v20 }
 0x108   : > { %v2593_v51 = vor.u32 %v1303_v34, %v1302_v21  ;;  %v795_v48 = vmul.f32 -0.00019511016, %v2579_v59  ;;  %vm971_vm7 = vcmp.lt.s32.totalorder %v2036_v1, 0  ;;  %vm1311_vm8 = vcmp.lt.s32.totalorder %v2581_v52, 1 }
 0x109   : > { %vm1314_vm9 = vcmp.lt.s32.totalorder %v2581_v52, 4  ;;  %v937_v39 = vsel %vm816_vm4, %v936_v30, %v935_v5  ;;  %v2601_v37 = vshrl.u32 %v1223_v61, 30  ;;  %v2603_v44 = vor.u32 %v1297_v13, %v1296_v15 }
 0x10a   : > { %vm1313_vm10 = vcmp.lt.s32.totalorder %v2581_v52, 3  ;;  %v1091_v63 = vxor.u32 2147483648, %v1090_v24  ;;  %v1320_v4 = vsel %vm1314_vm9, %v1307_v35, 920167782  ;;  %v1324_v8 = vsel %vm1314_vm9, %v1310_v54, 1326507024 }
 0x10b   : > { %v2610_v49 = vshll.u32 %v1287_v38, 8  ;;  %v788_v0 = vmul.f32 -0.001358992, %v2579_v59  ;;  %v1225_v46 = vshll.u32 %v2601_v37, 30  ;;  %vm1312_vm11 = vcmp.lt.s32.totalorder %v2581_v52, 2 }
 0x10c   : > { %v1323_v47 = vsel %vm1311_vm8, %v2591_v28, %v2593_v51  ;;  %v796_v5 = vadd.f32 0.008332121, %v795_v48  ;;  %v803_v62 = vadd.s32 3, %v786_v3  ;;  %v2874_v12 = vand.u32 2147483647, %v2036_v1 }
 0x10d   : > { %v1325_v2 = vsel %vm1313_vm10, %v1307_v35, %v1324_v8  ;;  %v2630_v22 = vsel %vm2562_vm5, %v1921_v31, %v937_v39  ;;  %v1226_v14 = vsub.s32 %v1222_v36, %v1225_v46  ;;  %v1319_v3 = vsel %vm1311_vm8, %v2603_v44, %v2591_v28 }
 0x10e   : > { %vm2621_vm12 = vcmp.le.f32.partialorder %v2874_v12, 0.7853982  ;;  %v1321_v40 = vsel %vm1313_vm10, %v2593_v51, %v1320_v4  ;;  %v1092_v45 = vsel %vm971_vm7, %v1091_v63, %v1090_v24  ;;  %v1326_v27 = vsel %vm1312_vm11, %v1323_v47, %v1325_v2 }
 0x10f   : > { %v1328_v16 = vand.u32 65535, %v2610_v49  ;;  %v1329_v20 = vshrl.u32 %v2610_v49, 16  ;;  %v2648_v41 = vsel %vm650_vm6, %v653_v33, %v2540_v7  ;;  %v789_v21 = vadd.f32 0.041655596, %v788_v0 }
 0x110   : > { %vm1227_vm14 = vcmp.lt.s32.totalorder %v1226_v14, 0  ;;  %v1228_v34 = vsub.s32 0, %v1226_v14  ;;  %v797_v42 = vmul.f32 %v796_v5, %v2579_v59  ;;  %v1322_v6 = vsel %vm1312_vm11, %v1319_v3, %v1321_v40 }
 0x111   : > { %v1330_v30 = vand.u32 65535, %v1326_v27  ;;  %v1331_v36 = vshrl.u32 %v1326_v27, 16  ;;  %v2653_v15 = vand.u32 3, %v803_v62  ;;  %v2657_v13 = vmul.f32 %v2630_v22, %v2630_v22 }
 0x112   : > { %v2662_v53 = vsel %vm2621_vm12, %v2036_v1, %v1092_v45  ;;  %v1229_v7 = vsel %vm1227_vm14, %v1228_v34, %v1226_v14  ;;  %v2667_v33 = vmul.f32 %v789_v21, %v2579_v59  ;;  %v1352_v48 = vand.u32 65535, %v1322_v6 }
 0x113   : > { %v1230_v24 = vclz %v1229_v7  ;;  %v1332_v38 = vmul.u32 %v1330_v30, %v1328_v16  ;;  %v1333_v35 = vmul.u32 %v1331_v36, %v1328_v16  ;;  %v2664_v54 = vmul.u32 %v1330_v30, %v1329_v20 }
 0x114   : > { %v1353_v39 = vshrl.u32 %v1322_v6, 16  ;;  %v2670_v63 = vadd.f32 -0.16666654, %v797_v42  ;;  %v1335_v8 = vmul.u32 %v1331_v36, %v1329_v20  ;;  %v943_v46 = vmul.f32 -0.001358992, %v2657_v13 }
 0x115   : > { %v1543_v4 = vadd.s32 4294967294, %v1230_v24  ;;  %v1336_v0 = vshll.u32 %v1333_v35, 16  ;;  %v950_v47 = vmul.f32 -0.00019511016, %v2657_v13  ;;  %v2676_v5 = vmul.f32 %v2662_v53, %v2662_v53 }
 0x116   : > { %v1338_v62 = vshll.u32 %v2664_v54, 16  ;;  %v1218_v12 = vadd.s32 %v2528_v55, %v2526_v60  ;;  %v1355_v45 = vmul.u32 %v1353_v39, %v1328_v16  ;;  %v1356_v27 = vmul.u32 %v1352_v48, %v1329_v20 }
 0x117   : > { %vm1544_vm15 = vcmp.lt.s32.totalorder %v1543_v4, 0  ;;  %vm1340_vm0 = vc.u32 %v1332_v38, %v1336_v0  ;;  %v1342_v2 = vadd.s32 %v1336_v0, %v1332_v38  ;;  %v951_v30 = vadd.f32 0.008332121, %v950_v47 }
 0x118   : > { %v1233_v3 = vsel %vm1544_vm15, 0, %v1543_v4  ;;  %v1341_v40 = vsel %vm1340_vm0, 1, %v1582_v9  ;;  %v1105_v36 = vmul.f32 -0.00019511016, %v2676_v5  ;;  %v1354_v7 = vmul.u32 %v1352_v48, %v1328_v16 }
 0x119   : > { %v1234_v21 = vsub.s32 32, %v1233_v3  ;;  %v1235_v34 = vshll.u32 %v1226_v14, %v1233_v3  ;;  %v1238_v42 = vsub.s32 4294967266, %v1233_v3  ;;  %v1343_v6 = vadd.s32 %v1341_v40, %v1335_v8 }
 0x11a   : > { %vm1344_vm1 = vc.u32 %v1342_v2, %v1338_v62  ;;  %v1337_v60 = vshrl.u32 %v1333_v35, 16  ;;  %v1357_v4 = vmul.u32 %v1353_v39, %v1329_v20  ;;  %v1358_v0 = vshll.u32 %v1355_v45, 16 }
 0x11b   : > { %v1236_v24 = vshrl.u32 %v1218_v12, %v1234_v21  ;;  %v1239_v10 = vadd.s32 127, %v1238_v42  ;;  %v1345_v55 = vsel %vm1344_vm1, 1, %v1582_v9  ;;  %v1360_v61 = vshll.u32 %v1356_v27, 16 }
 0x11c   : > { %v1347_v38 = vadd.s32 %v1345_v55, %v1343_v6  ;;  %v1098_v50 = vmul.f32 -0.001358992, %v2676_v5  ;;  %v2877_v8 = vmov 683565275   ;;  %v1316_v16 = vsel %vm1314_vm9, %v2593_v51, 2102212464 }
 0x11d   : > { %v1237_v43 = vor.u32 %v1236_v24, %v1235_v34  ;;  %v1240_v14 = vshll.u32 %v1239_v10, 23  ;;  %v1295_v47 = vshrl.u32 %v2877_v8, %v2545_v18  ;;  %v1339_v48 = vshrl.u32 %v2664_v54, 16 }
 0x11e   : > { %vm1362_vm2 = vc.u32 %v1354_v7, %v1358_v0  ;;  %v1364_v35 = vadd.s32 %v1358_v0, %v1354_v7  ;;  %v1348_v20 = vadd.s32 %v1347_v38, %v1337_v60  ;;  %v1106_v2 = vadd.f32 0.008332121, %v1105_v36 }
 0x11f   : > { %v1241_v62 = vor.u32 4788187, %v1240_v14  ;;  %v1244_v12 = vcvt.s32.f32 %v1237_v43  ;;  %v1363_v39 = vsel %vm1362_vm2, 1, %v1582_v9  ;;  %v1359_v3 = vshrl.u32 %v1355_v45, 16 }
 0x120   : > { %v1365_v40 = vadd.s32 %v1363_v39, %v1357_v4  ;;  %vm1366_vm3 = vc.u32 %v1364_v35, %v1360_v61  ;;  %v1315_v18 = vsel %vm1311_vm8, %v1295_v47, %v2603_v44  ;;  %v1317_v51 = vsel %vm1313_vm10, %v2591_v28, %v1316_v16 }
 0x121   : > { %v1242_v10 = vand.u32 2147483647, %v1241_v62  ;;  %v1367_v54 = vsel %vm1366_vm3, 1, %v1582_v9  ;;  %v944_v21 = vadd.f32 0.041655596, %v943_v46  ;;  %v952_v43 = vmul.f32 %v951_v30, %v2657_v13 }
 0x122   : > { %v1361_v34 = vshrl.u32 %v1356_v27, 16  ;;  %v1369_v42 = vadd.s32 %v1367_v54, %v1365_v40  ;;  %v1099_v6 = vadd.f32 0.041655596, %v1098_v50  ;;  %v2700_v36 = vadd.s32 %v1348_v20, %v1339_v48 }
 0x123   : > { %v1245_v45 = vmul.f32 %v1244_v12, %v1242_v10  ;;  %v2702_v7 = vadd.s32 %v1364_v35, %v1360_v61  ;;  %v1107_v24 = vmul.f32 %v1106_v2, %v2676_v5  ;;  %vm1126_vm13 = vcmp.lt.s32.totalorder %v2039_v26, 0 }
 0x124   : > { %v1318_v28 = vsel %vm1312_vm11, %v1315_v18, %v1317_v51  ;;  %v1370_v44 = vadd.s32 %v1369_v42, %v1359_v3  ;;  %v791_v9 = vadd.f32 -0.4999988, %v2667_v33  ;;  %v799_v46 = vmul.f32 %v2670_v63, %v2579_v59 }
 0x125   : > { %v2878_v50 = vand.u32 2147483647, %v2039_v26  ;;  %v1246_v61 = vxor.u32 2147483648, %v1245_v45  ;;  %v945_v30 = vmul.f32 %v944_v21, %v2657_v13  ;;  %v953_v60 = vadd.f32 -0.16666654, %v952_v43 }
 0x126   : > { %v1093_v55 = vsub.s32 4, %v2426_v32  ;;  %v1371_v52 = vadd.s32 %v1370_v44, %v1361_v34  ;;  %v1100_v38 = vmul.f32 %v1099_v6, %v2676_v5  ;;  %v1372_v63 = vmul.u32 %v2610_v49, %v1318_v28 }
 0x127   : > { %vm2713_vm6 = vcmp.le.f32.partialorder %v2878_v50, 0.7853982  ;;  %v1247_v33 = vsel %vm1126_vm13, %v1246_v61, %v1245_v45  ;;  %vm1374_vm8 = vc.u32 %v2700_v36, %v2702_v7  ;;  %v1108_v4 = vadd.f32 -0.16666654, %v1107_v24 }
 0x128   : > { %v1248_v0 = vsub.s32 4, %v2601_v37  ;;  %v2729_v14 = vsel %vm2713_vm6, %v2039_v26, %v1247_v33  ;;  %v1375_v8 = vadd.s32 1, %v1371_v52  ;;  %v792_v47 = vmul.f32 %v791_v9, %v2579_v59 }
 0x129   : > { %v800_v16 = vadd.f32 1.0, %v799_v46  ;;  %v2881_v48 = vsub.s32 4, %v2251_v29  ;;  %v1252_v35 = vmul.f32 %v2729_v14, %v2729_v14  ;;  %v946_v62 = vadd.f32 -0.4999988, %v945_v30 }
 0x12a   : > { %v954_v12 = vmul.f32 %v953_v60, %v2657_v13  ;;  %v1094_v20 = vsel %vm971_vm7, %v1093_v55, %v2426_v32  ;;  %v1376_v39 = vsel %vm1374_vm8, %v1375_v8, %v1371_v52  ;;  %vm806_vm9 = vcmp.eq.s32.totalorder %v2653_v15, 0 }
 0x12b   : > { %v939_v49 = vsel %vm816_vm4, %v2881_v48, %v2251_v29  ;;  %v1253_v59 = vmul.f32 -0.001358992, %v1252_v35  ;;  %v1260_v2 = vmul.f32 -0.00019511016, %v1252_v35  ;;  %v1377_v3 = vadd.s32 %v1376_v39, %v1372_v63 }
 0x12c   : > { %v941_v40 = vsel %vm2562_vm5, 0, %v939_v49  ;;  %v1101_v29 = vadd.f32 -0.4999988, %v1100_v38  ;;  %v1109_v10 = vmul.f32 %v1108_v4, %v2676_v5  ;;  %v1249_v18 = vsel %vm1126_vm13, %v1248_v0, %v2601_v37 }
 0x12d   : > { %v1096_v32 = vsel %vm2621_vm12, 0, %v1094_v20  ;;  %v1254_v51 = vadd.f32 0.041655596, %v1253_v59  ;;  %v1261_v54 = vadd.f32 0.008332121, %v1260_v2  ;;  %v1378_v21 = vadd.s32 536870912, %v1377_v3 }
 0x12e   : > { %v793_v43 = vadd.f32 1.0, %v792_v47  ;;  %v801_v34 = vmul.f32 %v800_v16, %v2551_v57  ;;  %v947_v25 = vmul.f32 %v946_v62, %v2657_v13  ;;  %v955_v42 = vadd.f32 1.0, %v954_v12 }
 0x12f   : > { %v1251_v6 = vsel %vm2713_vm6, 0, %v1249_v18  ;;  %v1255_v45 = vmul.f32 %v1254_v51, %v1252_v35  ;;  %v1262_v24 = vmul.f32 %v1261_v54, %v1252_v35  ;;  %v2756_v28 = vshrl.u32 %v1378_v21, 30 }
 0x130   : > { %v958_v37 = vadd.s32 3, %v941_v40  ;;  %v1102_v23 = vmul.f32 %v1101_v29, %v2676_v5  ;;  %v1110_v44 = vadd.f32 1.0, %v1109_v10  ;;  %v1113_v9 = vadd.s32 3, %v1096_v32  ;;  %v2882_v5 = vld [vmem:[#allocation2_spill] sm:$0xff] }
 0x131   : > { %vm809_vm4 = vcmp.eq.s32.totalorder %v2653_v15, 2  ;;  %v1256_v57 = vadd.f32 -0.4999988, %v1255_v45  ;;  %v1263_v13 = vadd.f32 -0.16666654, %v1262_v24  ;;  %v1380_v46 = vshll.u32 %v2756_v28, 30 }
 0x132   : > { %v807_v50 = vxor.u32 2147483648, %v801_v34  ;;  %v810_v27 = vxor.u32 2147483648, %v793_v43  ;;  %v948_v61 = vadd.f32 1.0, %v947_v25  ;;  %v1268_v30 = vadd.s32 3, %v1251_v6 }
 0x133   : > { %v956_v60 = vmul.f32 %v955_v42, %v2630_v22  ;;  %v1257_v55 = vmul.f32 %v1256_v57, %v1252_v35  ;;  %v1264_v52 = vmul.f32 %v1263_v13, %v1252_v35  ;;  %v2766_v38 = vsub.s32 %v1377_v3, %v1380_v46  ;;  %v1437_v57 = vld [vmem:[%s139_s22 + $0x18] sm:$0xff]  ;;  %v1439_v13 = vld [vmem:[%s139_s22 + $0x28] sm:$0xff] }
 0x134   : > { %vm492_vm5 = vweird.f32 %v1635_v17  ;;  %vm647_vm7 = vweird.f32 %v2882_v5  ;;  %v959_v33 = vand.u32 3, %v958_v37  ;;  %v1103_v63 = vadd.f32 1.0, %v1102_v23  ;;  %v1435_v23 = vld [vmem:[%s139_s22 + $0x8] sm:$0xff] }
 0x135   : > { %v1111_v4 = vmul.f32 %v1110_v44, %v2662_v53  ;;  %v1114_v0 = vand.u32 3, %v1113_v9  ;;  %v1258_v8 = vadd.f32 1.0, %v1257_v55  ;;  %v1265_v47 = vadd.f32 1.0, %v1264_v52  ;;  %v1436_v44 = vld [vmem:[%s139_s22 + $0x10] sm:$0xff]  ;;  %v1441_v52 = vld [vmem:[%s139_s22 + $0x38] sm:$0xff] }
 0x136   : > { %vm1382_vm10 = vcmp.lt.s32.totalorder %v2766_v38, 0  ;;  %v1383_v22 = vsub.s32 0, %v2766_v38  ;;  %vm802_vm11 = vweird.f32 %v1867_v58  ;;  %vm805_vm12 = vcmp.lt.s32.totalorder %v2653_v15, 2  ;;  %v1438_v58 = vld [vmem:[%s139_s22 + $0x20] sm:$0xff]  ;;  %v1440_v55 = vld [vmem:[%s139_s22 + $0x30] sm:$0xff] }
 0x137   : > { %v808_v16 = vsel %vm806_vm9, %v793_v43, %v807_v50  ;;  %v811_v48 = vsel %vm809_vm4, %v810_v27, %v801_v34  ;;  %v1269_v49 = vand.u32 3, %v1268_v30  ;;  %v962_v35 = vxor.u32 2147483648, %v956_v60 }
 0x138   : > { %v965_v53 = vxor.u32 2147483648, %v948_v61  ;;  %v1266_v62 = vmul.f32 %v1265_v47, %v2729_v14  ;;  %v1384_v12 = vsel %vm1382_vm10, %v1383_v22, %v2766_v38  ;;  %vm961_vm14 = vcmp.eq.s32.totalorder %v959_v33, 0 }
 0x139   : > { %vm964_vm15 = vcmp.eq.s32.totalorder %v959_v33, 2  ;;  %v1120_v20 = vxor.u32 2147483648, %v1103_v63  ;;  %v1385_v39 = vclz %v1384_v12  ;;  %v812_v59 = vsel %vm805_vm12, %v808_v16, %v811_v48 }
 0x13a   : > { %v1117_v2 = vxor.u32 2147483648, %v1111_v4  ;;  %vm1119_vm0 = vcmp.eq.s32.totalorder %v1114_v0, 2  ;;  %v1275_v15 = vxor.u32 2147483648, %v1258_v8  ;;  %vm1116_vm1 = vcmp.eq.s32.totalorder %v1114_v0, 0 }
 0x13b   : > { %v1272_v3 = vxor.u32 2147483648, %v1266_v62  ;;  %vm1274_vm2 = vcmp.eq.s32.totalorder %v1269_v49, 2  ;;  %v1546_v40 = vadd.s32 4294967294, %v1385_v39  ;;  %vm960_vm3 = vcmp.lt.s32.totalorder %v959_v33, 2 }
 0x13c   : > { %v963_v14 = vsel %vm961_vm14, %v948_v61, %v962_v35  ;;  %v966_v29 = vsel %vm964_vm15, %v965_v53, %v956_v60  ;;  %vm1271_vm13 = vcmp.eq.s32.totalorder %v1269_v49, 0  ;;  %vm1115_vm6 = vcmp.lt.s32.totalorder %v1114_v0, 2 }
 0x13d   : > { %v1121_v10 = vsel %vm1119_vm0, %v1120_v20, %v1111_v4  ;;  %v1373_v18 = vadd.s32 %v2702_v7, %v2700_v36  ;;  %vm1547_vm8 = vcmp.lt.s32.totalorder %v1546_v40, 0  ;;  %v1118_v32 = vsel %vm1116_vm1, %v1103_v63, %v1117_v2 }
 0x13e   : > { %vm1270_vm9 = vcmp.lt.s32.totalorder %v1269_v49, 2  ;;  %v1276_v51 = vsel %vm1274_vm2, %v1275_v15, %v1266_v62  ;;  %v1388_v54 = vsel %vm1547_vm8, 0, %v1546_v40  ;;  %v1273_v21 = vsel %vm1271_vm13, %v1258_v8, %v1272_v3 }
 0x13f   : > { %v1389_v43 = vsub.s32 32, %v1388_v54  ;;  %v1390_v34 = vshll.u32 %v2766_v38, %v1388_v54  ;;  %v1393_v25 = vsub.s32 4294967266, %v1388_v54  ;;  %v503_v42 = vsel %vm492_vm5, nan, %v2396_v19 }
 0x140   : > { %v658_v36 = vsel %vm647_vm7, nan, %v2648_v41  ;;  %vm957_vm4 = vweird.f32 %v1921_v31  ;;  %v967_v7 = vsel %vm960_vm3, %v963_v14, %v966_v29  ;;  %vm1112_vm10 = vweird.f32 %v2036_v1  ;;  %v1434_v1 = vld [vmem:[%s139_s22] sm:$0xff] }
 0x141   : > { %v1122_v6 = vsel %vm1115_vm6, %v1118_v32, %v1121_v10  ;;  %v1391_v45 = vshrl.u32 %v1373_v18, %v1389_v43  ;;  %v1394_v24 = vadd.s32 127, %v1393_v25  ;;  %v813_v37 = vsel %vm802_vm11, nan, %v812_v59 }
 0x142   : > { %vm1267_vm12 = vweird.f32 %v2039_v26  ;;  %v1277_v17 = vsel %vm1270_vm9, %v1273_v21, %v1276_v51  ;;  %v968_v31 = vsel %vm957_vm4, nan, %v967_v7  ;;  %v1123_v9 = vsel %vm1112_vm10, nan, %v1122_v6 }
 0x143   : > { %v1392_v19 = vor.u32 %v1391_v45, %v1390_v34  ;;  %v1395_v41 = vshll.u32 %v1394_v24, 23  ;;  %v1442_v46 = vadd.f32 %v1434_v1, %v2392_v56  ;;  %v1443_v50 = vadd.f32 %v1435_v23, %v503_v42 }
 0x144   : > { %v1444_v27 = vadd.f32 %v1436_v44, %v658_v36  ;;  %v1278_v61 = vsel %vm1267_vm12, nan, %v1277_v17  ;;  %v1445_v38 = vadd.f32 %v1437_v57, %v813_v37  ;;  %v1446_v5 = vadd.f32 %v1438_v58, %v968_v31 }
 0x145   : > { %v1396_v30 = vor.u32 4788187, %v1395_v41  ;;  %v1399_v60 = vcvt.s32.f32 %v1392_v19  ;;  %1450 = vst [vmem:[%s2811_s25] sm:$0xff] %v1442_v46  ;;  %v1447_v63 = vadd.f32 %v1439_v13, %v1123_v9  ;;  %v1448_v56 = vadd.f32 %v1440_v55, %v1278_v61 }
 0x146   : > { %1451 = vst [vmem:[%s2811_s25 + $0x8] sm:$0xff] %v1443_v50  ;;  %vm1281_vm5 = vcmp.lt.s32.totalorder %v2385_v11, 0  ;;  %v1403_v26 = vsub.s32 4, %v2756_v28  ;;  %v2883_v0 = vand.u32 2147483647, %v2385_v11  ;;  %vm1422_vm0 = vweird.f32 %v2385_v11 }
 0x147   : > { %v1397_v33 = vand.u32 2147483647, %v1396_v30  ;;  %1452 = vst [vmem:[%s2811_s25 + $0x10] sm:$0xff] %v1444_v27 }
 0x148   : > { %1453 = vst [vmem:[%s2811_s25 + $0x18] sm:$0xff] %v1445_v38  ;;  %vm1280_vm7 = vcmp.le.f32.partialorder %v2883_v0, 0.7853982  ;;  %v1404_v22 = vsel %vm1281_vm5, %v1403_v26, %v2756_v28 }
 0x149   : > { %v1400_v4 = vmul.f32 %v1399_v60, %v1397_v33  ;;  %1454 = vst [vmem:[%s2811_s25 + $0x20] sm:$0xff] %v1446_v5  ;;  %v1406_v49 = vsel %vm1280_vm7, 0, %v1404_v22 }
 0x14a   : > { %1455 = vst [vmem:[%s2811_s25 + $0x28] sm:$0xff] %v1447_v63  ;;  %v1423_v20 = vadd.s32 3, %v1406_v49 }
 0x14b   : > { %v1401_v8 = vxor.u32 2147483648, %v1400_v4  ;;  %1456 = vst [vmem:[%s2811_s25 + $0x30] sm:$0xff] %v1448_v56 }
 0x14c   : > { %v1424_v3 = vand.u32 3, %v1423_v20 }
 0x14d   : > { %v1402_v47 = vsel %vm1281_vm5, %v1401_v8, %v1400_v4 }
 0x14e   : > { %v1405_v16 = vsel %vm1280_vm7, %v2385_v11, %v1402_v47  ;;  %vm1429_vm11 = vcmp.eq.s32.totalorder %v1424_v3, 2  ;;  %vm1426_vm14 = vcmp.eq.s32.totalorder %v1424_v3, 0  ;;  %vm1425_vm15 = vcmp.lt.s32.totalorder %v1424_v3, 2 }
 0x14f   : > { %v1407_v48 = vmul.f32 %v1405_v16, %v1405_v16 }
 0x151   : > { %v1408_v35 = vmul.f32 -0.001358992, %v1407_v48  ;;  %v1415_v53 = vmul.f32 -0.00019511016, %v1407_v48 }
 0x153   : > { %v1409_v62 = vadd.f32 0.041655596, %v1408_v35  ;;  %v1416_v12 = vadd.f32 0.008332121, %v1415_v53 }
 0x155   : > { %v1410_v39 = vmul.f32 %v1409_v62, %v1407_v48  ;;  %v1417_v59 = vmul.f32 %v1416_v12, %v1407_v48 }
 0x157   : > { %v1411_v2 = vadd.f32 -0.4999988, %v1410_v39  ;;  %v1418_v15 = vadd.f32 -0.16666654, %v1417_v59 }
 0x159   : > { %v1412_v40 = vmul.f32 %v1411_v2, %v1407_v48  ;;  %v1419_v14 = vmul.f32 %v1418_v15, %v1407_v48 }
 0x15b   : > { %v1413_v29 = vadd.f32 1.0, %v1412_v40  ;;  %v1420_v10 = vadd.f32 1.0, %v1419_v14 }
 0x15d   : > { %v1421_v28 = vmul.f32 %v1420_v10, %v1405_v16  ;;  %v1430_v18 = vxor.u32 2147483648, %v1413_v29 }
 0x15f   : > { %v1427_v32 = vxor.u32 2147483648, %v1421_v28  ;;  %v1431_v51 = vsel %vm1429_vm11, %v1430_v18, %v1421_v28 }
 0x161   : > { %v1428_v54 = vsel %vm1426_vm14, %v1413_v29, %v1427_v32 }
 0x162   : > { %v1432_v21 = vsel %vm1425_vm15, %v1428_v54, %v1431_v51 }
 0x163   : > { %v1433_v43 = vsel %vm1422_vm0, nan, %v1432_v21 }
 0x164   : > { %v1449_v34 = vadd.f32 %v1441_v52, %v1433_v43 }
 0x166   : > { %1457 = vst [vmem:[%s2811_s25 + $0x38] sm:$0xff] %v1449_v34 }
 0x167 PF: > { %s12_s9 = sadd.s32 1, %s1574_s9  }
 0x168   : > { %p9_p4 = scmp.ge.s32.totalorder %s12_s9, 4  }
 0x16a   :  { %11 = sbr.rel (!%p9_p4) target bundleno = 1 (0x1), region = 58 }

</bundles_post_ra>
